<compile_context>
chip_gen: v7x
topology: tpu7x:2x2x1
jax: 0.10.0
libtpu: 0.0.40
codegen_flags: <defaults>
</compile_context>

<pallas_src>
import math
import functools

import jax
import jax.numpy as jnp
from jax.experimental import pallas as pl
from jax.experimental.pallas import tpu as pltpu


def _attention_kernel(q_ref, k_ref, v_ref, o_ref, *, scale):
    # q_ref/k_ref/v_ref: (BH, T, D) slabs fully resident in VMEM.
    q = q_ref[...].astype(jnp.float32)
    k = k_ref[...].astype(jnp.float32)
    v = v_ref[...].astype(jnp.float32)

    # Scores: batched (per-head) matmul, contraction over D (lane-dense, 128).
    s = jnp.einsum("bqd,bkd->bqk", q, k, preferred_element_type=jnp.float32) * scale

    # Numerically-stable softmax; the divide goes to the EUP slot.
    m = jnp.max(s, axis=-1, keepdims=True)
    p = jnp.exp(s - m)
    den = jnp.sum(p, axis=-1, keepdims=True)
    p = p * pl.reciprocal(den, approx=True)

    # attn_dropout is identity in eval mode (p = 0).
    o = jnp.einsum("bqk,bkd->bqd", p.astype(v.dtype), v,
                   preferred_element_type=jnp.float32)
    o_ref[...] = o.astype(o_ref.dtype)


def _attention_kernel_masked(q_ref, k_ref, v_ref, mask_ref, o_ref, *, scale):
    q = q_ref[...].astype(jnp.float32)
    k = k_ref[...].astype(jnp.float32)
    v = v_ref[...].astype(jnp.float32)

    s = jnp.einsum("bqd,bkd->bqk", q, k, preferred_element_type=jnp.float32) * scale
    s = s + mask_ref[...]                      # additive attention mask

    m = jnp.max(s, axis=-1, keepdims=True)
    p = jnp.exp(s - m)
    den = jnp.sum(p, axis=-1, keepdims=True)
    p = p * pl.reciprocal(den, approx=True)

    o = jnp.einsum("bqk,bkd->bqd", p.astype(v.dtype), v,
                   preferred_element_type=jnp.float32)
    o_ref[...] = o.astype(o_ref.dtype)


def flash_attention(q, k, v, attention_mask=None):
    """q, k, v: (B, H, T, D).  attention_mask: additive, broadcastable to (B, H, T, T)."""
    B, H, T, D = q.shape
    BH = B * H
    scale = 1.0 / math.sqrt(D)

    # Fold batch and heads into one leading axis; whole problem fits in VMEM,
    # so a single grid step (no per-step pipeline overhead).
    qf = q.reshape(BH, T, D)
    kf = k.reshape(BH, T, D)
    vf = v.reshape(BH, T, D)

    def full(shape):
        return pl.BlockSpec(shape, lambda i: (0,) * len(shape))

    common = dict(
        out_shape=jax.ShapeDtypeStruct((BH, T, D), q.dtype),
        grid=(1,),
        out_specs=pl.BlockSpec((BH, T, D), lambda i: (0, 0, 0)),
        compiler_params=pltpu.CompilerParams(dimension_semantics=("arbitrary",)),
    )

    if attention_mask is None:
        out = pl.pallas_call(
            functools.partial(_attention_kernel, scale=scale),
            in_specs=[full((BH, T, D)), full((BH, T, D)), full((BH, T, D))],
            **common,
        )(qf, kf, vf)
    else:
        maskf = jnp.broadcast_to(attention_mask, (B, H, T, T))
        maskf = maskf.reshape(BH, T, T).astype(jnp.float32)
        out = pl.pallas_call(
            functools.partial(_attention_kernel_masked, scale=scale),
            in_specs=[full((BH, T, D)), full((BH, T, D)), full((BH, T, D)),
                      full((BH, T, T))],
            **common,
        )(qf, kf, vf, maskf)

    return out.reshape(B, H, T, D)


def reference(q, k, v, mask=None):
    # pure-JAX reference of the same forward pass (sanity check)
    s = jnp.einsum("bhqd,bhkd->bhqk", q, k) / math.sqrt(q.shape[-1])
    if mask is not None:
        s = s + mask
    p = jax.nn.softmax(s, axis=-1)
    return jnp.einsum("bhqk,bhkd->bhqd", p, v)


if __name__ == "__main__":
    # Config: hidden_size=256, num_attention_heads=2 -> head_dim=128 (lane-dense).
    B, H, T, D = 2, 2, 128, 128

    key = jax.random.PRNGKey(0)
    kq, kk, kv = jax.random.split(key, 3)
    q = jax.random.normal(kq, (B, H, T, D), dtype=jnp.float32)
    k = jax.random.normal(kk, (B, H, T, D), dtype=jnp.float32)
    v = jax.random.normal(kv, (B, H, T, D), dtype=jnp.float32)

    # No-mask path (module default).
    out = jax.block_until_ready(flash_attention(q, k, v))
    ref = reference(q, k, v)
    assert out.shape == (B, H, T, D)
    assert jnp.allclose(out, ref, atol=2e-3, rtol=2e-3), "mismatch vs reference (no mask)"

    # Optional additive-mask path (causal mask as an example).
    causal = jnp.where(jnp.tril(jnp.ones((T, T), jnp.bool_)), 0.0, -1e9)
    mask = causal.astype(jnp.float32)[None, None]          # (1, 1, T, T), broadcastable
    out_m = jax.block_until_ready(flash_attention(q, k, v, attention_mask=mask))
    ref_m = reference(q, k, v, mask)
    assert jnp.allclose(out_m, ref_m, atol=2e-3, rtol=2e-3), "mismatch vs reference (masked)"

    print("KERNEL_OK")
</pallas_src>

<mosaic_0001>
module attributes {stable_mosaic.version = 11 : i64} {
  func.func @_attention_kernel(%arg0: i32, %arg1: memref<4x128x128xf32, #tpu.memory_space<vmem>>, %arg2: memref<4x128x128xf32, #tpu.memory_space<vmem>>, %arg3: memref<4x128x128xf32, #tpu.memory_space<vmem>>, %arg4: memref<4x128x128xf32, #tpu.memory_space<vmem>>) attributes {dimension_semantics = [#tpu.dimension_semantics<arbitrary>], iteration_bounds = array<i64: 1>, scalar_prefetch = 0 : i64, scratch_operands = 0 : i64, tpu.core_type = #tpu.core_type<tc>, window_params = [{pipeline_mode = #tpu.pipeline_mode<synchronous>, transform_indices = @transform_0, window_bounds = array<i64: 4, 128, 128>}, {pipeline_mode = #tpu.pipeline_mode<synchronous>, transform_indices = @transform_1, window_bounds = array<i64: 4, 128, 128>}, {pipeline_mode = #tpu.pipeline_mode<synchronous>, transform_indices = @transform_2, window_bounds = array<i64: 4, 128, 128>}, {pipeline_mode = #tpu.pipeline_mode<synchronous>, transform_indices = @transform_3, window_bounds = array<i64: 4, 128, 128>}]} {
    %c0 = arith.constant 0 : index
    %c0_0 = arith.constant 0 : index
    %c0_1 = arith.constant 0 : index
    %0 = vector.load %arg1[%c0, %c0_0, %c0_1] : memref<4x128x128xf32, #tpu.memory_space<vmem>>, vector<4x128x128xf32>
    %c0_2 = arith.constant 0 : index
    %c0_3 = arith.constant 0 : index
    %c0_4 = arith.constant 0 : index
    %1 = vector.load %arg2[%c0_2, %c0_3, %c0_4] : memref<4x128x128xf32, #tpu.memory_space<vmem>>, vector<4x128x128xf32>
    %c0_5 = arith.constant 0 : index
    %c0_6 = arith.constant 0 : index
    %c0_7 = arith.constant 0 : index
    %2 = vector.load %arg3[%c0_5, %c0_6, %c0_7] : memref<4x128x128xf32, #tpu.memory_space<vmem>>, vector<4x128x128xf32>
    "tpu.trace_start"() <{level = 10 : i32, message = "bqd,bkd->bqk"}> : () -> ()
    %cst = arith.constant dense<0.000000e+00> : vector<4x128x128xf32>
    %3 = tpu.matmul %0, %1, %cst {dimension_numbers = #tpu.dot_dimension_numbers<[2], [2], [1], [1], [0, 0, 0, 1, 1, 1], [0], [0]>} : vector<4x128x128xf32>, vector<4x128x128xf32>, vector<4x128x128xf32> -> vector<4x128x128xf32>
    "tpu.trace_stop"() : () -> ()
    %cst_8 = arith.constant 0.0883883461 : f32
    %4 = vector.broadcast %cst_8 : f32 to vector<4x128x128xf32>
    %5 = arith.mulf %3, %4 : vector<4x128x128xf32>
    %cst_9 = arith.constant dense<0xFF800000> : vector<4x128xf32>
    %6 = vector.multi_reduction <maximumf>, %5, %cst_9 [2] : vector<4x128x128xf32> to vector<4x128xf32>
    %7 = vector.shape_cast %6 : vector<4x128xf32> to vector<4x128x1xf32>
    %8 = vector.broadcast %7 : vector<4x128x1xf32> to vector<4x128x128xf32>
    %9 = arith.subf %5, %8 : vector<4x128x128xf32>
    %10 = math.exp %9 : vector<4x128x128xf32>
    %cst_10 = arith.constant dense<0.000000e+00> : vector<4x128xf32>
    %11 = vector.multi_reduction <add>, %10, %cst_10 [2] : vector<4x128x128xf32> to vector<4x128xf32>
    %12 = vector.shape_cast %11 : vector<4x128xf32> to vector<4x128x1xf32>
    %13 = tpu.reciprocal %12 {approx = true} : vector<4x128x1xf32> -> vector<4x128x1xf32>
    %14 = vector.broadcast %13 : vector<4x128x1xf32> to vector<4x128x128xf32>
    %15 = arith.mulf %10, %14 : vector<4x128x128xf32>
    "tpu.trace_start"() <{level = 10 : i32, message = "bqk,bkd->bqd"}> : () -> ()
    %cst_11 = arith.constant dense<0.000000e+00> : vector<4x128x128xf32>
    %16 = tpu.matmul %15, %2, %cst_11 {dimension_numbers = #tpu.dot_dimension_numbers<[2], [1], [1], [2], [0, 0, 0, 1, 1, 2], [0], [0]>} : vector<4x128x128xf32>, vector<4x128x128xf32>, vector<4x128x128xf32> -> vector<4x128x128xf32>
    "tpu.trace_stop"() : () -> ()
    %c0_12 = arith.constant 0 : index
    %c0_13 = arith.constant 0 : index
    %c0_14 = arith.constant 0 : index
    %17 = vector.load %arg4[%c0_12, %c0_13, %c0_14] : memref<4x128x128xf32, #tpu.memory_space<vmem>>, vector<4x128x128xf32>
    tpu.vector_store %arg4[%c0_12, %c0_13, %c0_14], %16 {strides = array<i32>} : memref<4x128x128xf32, #tpu.memory_space<vmem>>, vector<4x128x128xf32>,
    return
  }
  func.func @transform_0(%arg0: i32) -> (i32, i32, i32) {
    %c0_i32 = arith.constant 0 : i32
    %c0_i32_0 = arith.constant 0 : i32
    %c0_i32_1 = arith.constant 0 : i32
    %c0_i32_2 = arith.constant 0 : i32
    return %c0_i32, %c0_i32_0, %c0_i32_1 : i32, i32, i32
  }
  func.func @transform_1(%arg0: i32) -> (i32, i32, i32) {
    %c0_i32 = arith.constant 0 : i32
    %c0_i32_0 = arith.constant 0 : i32
    %c0_i32_1 = arith.constant 0 : i32
    %c0_i32_2 = arith.constant 0 : i32
    return %c0_i32, %c0_i32_0, %c0_i32_1 : i32, i32, i32
  }
  func.func @transform_2(%arg0: i32) -> (i32, i32, i32) {
    %c0_i32 = arith.constant 0 : i32
    %c0_i32_0 = arith.constant 0 : i32
    %c0_i32_1 = arith.constant 0 : i32
    %c0_i32_2 = arith.constant 0 : i32
    return %c0_i32, %c0_i32_0, %c0_i32_1 : i32, i32, i32
  }
  func.func @transform_3(%arg0: i32) -> (i32, i32, i32) {
    %c0_i32 = arith.constant 0 : i32
    %c0_i32_0 = arith.constant 0 : i32
    %c0_i32_1 = arith.constant 0 : i32
    %c0_i32_2 = arith.constant 0 : i32
    return %c0_i32, %c0_i32_0, %c0_i32_1 : i32, i32, i32
  }
}

</mosaic_0001>

<bundles_post_ra>
// kernel: tpu_custom_call.1
= control target key start
LH: loop header
LB: loop body
LE: loop exit
PB: predicated region body
PF: predicated region fallthrough
CT: control target
= control target key end

     0   :  { %8 = vsyncpa [#allocation3], 0  ;;  %s4059_s0 = inlined_call_operand.hbm [shape: f32[4,128,128], index: 0, kind: input, shape index: {}]   ;;  %s4060_s1 = inlined_call_operand.hbm [shape: f32[4,128,128], index: 1, kind: input, shape index: {}]   ;;  %s4061_s2 = inlined_call_operand.hbm [shape: f32[4,128,128], index: 2, kind: input, shape index: {}]   ;;  %s4062_s3 = inlined_call_operand.hbm [shape: f32[4,128,128], index: 3, kind: output, shape index: {}]  }
   0x1   :  { %9 = vsyncpa [#allocation6], 0 }
   0x2   :  { %10 = vsyncpa [#allocation4], 0  ;;  %s3446_s12 = smov [#allocation5]   ;;  %s3447_s14 = smov [#allocation2]  }
   0x3   :  { %s28_s13 = sshll.u32 %s3446_s12, 4  ;;  %s16_s15 = sshll.u32 %s3447_s14, 4  ;;  %s29_s13 = int_to_ptr.vmem [resolvable:$true] %s28_s13  ;;  %s3472_s15 = int_to_ptr.vmem [resolvable:$true] %s16_s15 }
   0x4   :  { %s3352_s18 = scalar_lea.hbm %s4060_s1, 8192 }
   0x5   :  { %p3353_p0 = scmp.ne.s32.totalorder %s4060_s1, %s3352_s18  ;;  %p3356_p1 = scmp.lt.u32.totalorder %s3352_s18, %s4060_s1 }
   0x7   :  { %p3358_p2 = pnand %p3356_p1, %p3353_p0 }
   0x9   :  { %3361 = shalt.err (!%p3358_p2)
}
   0xa   :  { %s3362_s23 = scalar_lea.vmem %s29_s13, 8192  ;;  %p3367_p4 = scmp.lt.s32.totalorder %s29_s13, %s29_s13 }
   0xb   :  { %p3363_p3 = scmp.ne.s32.totalorder %s29_s13, %s3362_s23  ;;  %p3368_p5 = scmp.lt.s32.totalorder %s3362_s23, %s3362_s23 }
   0xd   :  { %p3369_p6 = por %p3368_p5, %p3367_p4 }
   0xf   :  { %p3370_p7 = pnand %p3369_p6, %p3363_p3 }
  0x11   :  { %3373 = shalt.err (!%p3370_p7)
}
  0x12   :  { %s3448_s24 = smov 128   ;;  %s3449_s25 = smov 8  }
  0x13   :  { %34 = dma.hbm_to_vmem [thread:$0]  %s4060_s1, 8192, %s29_s13, [#allocation6], %s3448_s24, %s3448_s24, %s3449_s25  }
  0x14   :  { %s3374_s30 = scalar_lea.hbm %s4059_s0, 8192 }
  0x15   :  { %p3375_p8 = scmp.ne.s32.totalorder %s4059_s0, %s3374_s30  ;;  %p3378_p9 = scmp.lt.u32.totalorder %s3374_s30, %s4059_s0 }
  0x17   :  { %p3380_p10 = pnand %p3378_p9, %p3375_p8 }
  0x19   :  { %3383 = shalt.err (!%p3380_p10)
}
  0x1a   :  { %s3384_s8 = scalar_lea.vmem %s3472_s15, 8192  ;;  %p3389_p12 = scmp.lt.s32.totalorder %s3472_s15, %s3472_s15 }
  0x1b   :  { %p3385_p11 = scmp.ne.s32.totalorder %s3472_s15, %s3384_s8  ;;  %p3390_p13 = scmp.lt.s32.totalorder %s3384_s8, %s3384_s8 }
  0x1d   :  { %p3391_p0 = por %p3390_p13, %p3389_p12 }
  0x1f   :  { %p3392_p1 = pnand %p3391_p0, %p3385_p11 }
  0x21   :  { %3395 = shalt.err (!%p3392_p1)
}
  0x22   :  { %22 = dma.hbm_to_vmem [thread:$0]  %s4059_s0, 8192, %s3472_s15, [#allocation3], %s3448_s24, %s3448_s24, %s3449_s25  }
  0x23   :  { %s3450_s10 = smov [#allocation7]   ;;  %s3396_s14 = scalar_lea.hbm %s4061_s2, 8192 }
  0x24   :  { %s40_s11 = sshll.u32 %s3450_s10, 4  ;;  %p3397_p2 = scmp.ne.s32.totalorder %s4061_s2, %s3396_s14  ;;  %s41_s11 = int_to_ptr.vmem [resolvable:$true] %s40_s11 }
  0x25   :  { %p3400_p3 = scmp.lt.u32.totalorder %s3396_s14, %s4061_s2 }
  0x27   :  { %p3402_p4 = pnand %p3400_p3, %p3397_p2 }
  0x29   :  { %3405 = shalt.err (!%p3402_p4)
}
  0x2a   :  { %s3406_s20 = scalar_lea.vmem %s41_s11, 8192  ;;  %p3411_p6 = scmp.lt.s32.totalorder %s41_s11, %s41_s11 }
  0x2b   :  { %p3407_p5 = scmp.ne.s32.totalorder %s41_s11, %s3406_s20  ;;  %p3412_p7 = scmp.lt.s32.totalorder %s3406_s20, %s3406_s20 }
  0x2d   :  { %p3413_p8 = por %p3412_p7, %p3411_p6 }
  0x2f   :  { %p3414_p9 = pnand %p3413_p8, %p3407_p5 }
  0x31   :  { %3417 = shalt.err (!%p3414_p9)
}
  0x32   :  { %46 = dma.hbm_to_vmem [thread:$0]  %s4061_s2, 8192, %s41_s11, [#allocation6], %s3448_s24, %s3448_s24, %s3449_s25  }
  0x33   :  { %3440 = dma.done.wait [#allocation3], 8192  }
  0x34   :  { %3441 = vsyncadd [#allocation3], 4294959104 }
  0x35   :  { %3442 = dma.done.wait [#allocation6], 16384  }
  0x36   :  { %3443 = vsyncadd [#allocation6], 4294950912  ;;  %v120_v0 = vld [vmem:[#allocation5] sm:$0xff]  ;;  %v121_v1 = vld [vmem:[#allocation5 + $0x8] sm:$0xff]  ;;  %s3451_s2 = smov [#allocation8]  }
  0x37   :  { %v136_v2 = vld [vmem:[#allocation5 + $0x80] sm:$0xff]  ;;  %v2834_v3 = vpack.c.bf16 %v121_v1, %v120_v0  ;;  %v137_v4 = vld [vmem:[#allocation5 + $0x88] sm:$0xff]  ;;  %v122_v5 = vld [vmem:[#allocation5 + $0x10] sm:$0xff]  ;;  %s2117_s21 = sshll.u32 %s3451_s2, 4  ;;  %s2118_s21 = int_to_ptr.vmem [resolvable:$true] %s2117_s21 }
  0x38   :  { %v123_v6 = vld [vmem:[#allocation5 + $0x18] sm:$0xff]  ;;  %v2866_v7 = vpack.c.bf16 %v137_v4, %v136_v2  ;;  %v138_v9 = vld [vmem:[#allocation5 + $0x90] sm:$0xff]  ;;  %v124_v12 = vld [vmem:[#allocation5 + $0x20] sm:$0xff]  ;;  %s3418_s22 = scalar_lea.vmem %s2118_s21, 8192  ;;  %p3423_p11 = scmp.lt.s32.totalorder %s2118_s21, %s2118_s21 }
  0x39   :  { %v2838_v8 = vpack.c.bf16 %v123_v6, %v122_v5  ;;  %v139_v10 = vld [vmem:[#allocation5 + $0x98] sm:$0xff]  ;;  %2835 = vmatprep.subr.bf16.mxu0 %v2834_v3  ;;  %v125_v13 = vld [vmem:[#allocation5 + $0x28] sm:$0xff]  ;;  %v140_v14 = vld [vmem:[#allocation5 + $0xa0] sm:$0xff]  ;;  %p3419_p10 = scmp.ne.s32.totalorder %s2118_s21, %s3418_s22  ;;  %p3424_p12 = scmp.lt.s32.totalorder %s3418_s22, %s3418_s22 }
  0x3a   :  { %v2870_v11 = vpack.c.bf16 %v139_v10, %v138_v9  ;;  %2867 = vmatprep.subr.bf16.mxu1 %v2866_v7  ;;  %2837 = vmatpush3.bf16.xpose.msra.mxu0 %v2834_v3  ;;  %v141_v15 = vld [vmem:[#allocation5 + $0xa8] sm:$0xff]  ;;  %v2842_v16 = vpack.c.bf16 %v125_v13, %v124_v12  ;;  %v56_v18 = vld [vmem:[#allocation2] sm:$0xff]  ;;  %v126_v20 = vld [vmem:[#allocation5 + $0x30] sm:$0xff] }
  0x3b   :  { %2869 = vmatpush3.bf16.xpose.msra.mxu1 %v2866_v7  ;;  %2839 = vmatprep.subr.bf16.mxu0 %v2838_v8  ;;  %v2874_v17 = vpack.c.bf16 %v141_v15, %v140_v14  ;;  %v72_v19 = vld [vmem:[#allocation2 + $0x80] sm:$0xff]  ;;  %v127_v21 = vld [vmem:[#allocation5 + $0x38] sm:$0xff]  ;;  %v142_v22 = vld [vmem:[#allocation5 + $0xb0] sm:$0xff]  ;;  %p3425_p13 = por %p3424_p12, %p3423_p11 }
  0x3c   :  { %2871 = vmatprep.subr.bf16.mxu1 %v2870_v11  ;;  %2418 = vmatprep.mubr.f32.mxu0 %v56_v18  ;;  %v143_v23 = vld [vmem:[#allocation5 + $0xb8] sm:$0xff]  ;;  %v2846_v24 = vpack.c.bf16 %v127_v21, %v126_v20  ;;  %v128_v26 = vld [vmem:[#allocation5 + $0x40] sm:$0xff]  ;;  %v129_v27 = vld [vmem:[#allocation5 + $0x48] sm:$0xff] }
  0x3d   :  { %2474 = vmatprep.mubr.f32.mxu1 %v72_v19  ;;  %v2878_v25 = vpack.c.bf16 %v143_v23, %v142_v22  ;;  %v144_v28 = vld [vmem:[#allocation5 + $0xc0] sm:$0xff]  ;;  %v145_v29 = vld [vmem:[#allocation5 + $0xc8] sm:$0xff]  ;;  %v2850_v30 = vpack.c.bf16 %v129_v27, %v128_v26  ;;  %v130_v32 = vld [vmem:[#allocation5 + $0x50] sm:$0xff]  ;;  %p3426_p0 = pnand %p3425_p13, %p3419_p10 }
  0x3e   :  { %v2882_v31 = vpack.c.bf16 %v145_v29, %v144_v28  ;;  %v131_v33 = vld [vmem:[#allocation5 + $0x58] sm:$0xff]  ;;  %v146_v34 = vld [vmem:[#allocation5 + $0xd0] sm:$0xff]  ;;  %v132_v38 = vld [vmem:[#allocation5 + $0x60] sm:$0xff] }
  0x3f   :  { %v147_v35 = vld [vmem:[#allocation5 + $0xd8] sm:$0xff]  ;;  %v2854_v36 = vpack.c.bf16 %v131_v33, %v130_v32  ;;  %v133_v39 = vld [vmem:[#allocation5 + $0x68] sm:$0xff]  ;;  %v148_v40 = vld [vmem:[#allocation5 + $0xe0] sm:$0xff] }
  0x40   :  { %v2886_v37 = vpack.c.bf16 %v147_v35, %v146_v34  ;;  %v149_v41 = vld [vmem:[#allocation5 + $0xe8] sm:$0xff]  ;;  %v2858_v42 = vpack.c.bf16 %v133_v39, %v132_v38  ;;  %v134_v44 = vld [vmem:[#allocation5 + $0x70] sm:$0xff]  ;;  %v135_v45 = vld [vmem:[#allocation5 + $0x78] sm:$0xff] }
  0x41   :  { %v2890_v43 = vpack.c.bf16 %v149_v41, %v148_v40  ;;  %v150_v46 = vld [vmem:[#allocation5 + $0xf0] sm:$0xff]  ;;  %v151_v47 = vld [vmem:[#allocation5 + $0xf8] sm:$0xff]  ;;  %v2862_v48 = vpack.c.bf16 %v135_v45, %v134_v44  ;;  %v152_v50 = vld [vmem:[#allocation5 + $0x100] sm:$0xff] }
  0x42   :  { %2841 = vmatpush3.bf16.xpose.msra.mxu0 %v2838_v8  ;;  %v2894_v49 = vpack.c.bf16 %v151_v47, %v150_v46  ;;  %v153_v51 = vld [vmem:[#allocation5 + $0x108] sm:$0xff]  ;;  %v168_v52 = vld [vmem:[#allocation5 + $0x180] sm:$0xff]  ;;  %v154_v56 = vld [vmem:[#allocation5 + $0x110] sm:$0xff] }
  0x43   :  { %2873 = vmatpush3.bf16.xpose.msra.mxu1 %v2870_v11  ;;  %2843 = vmatprep.subr.bf16.mxu0 %v2842_v16  ;;  %v169_v53 = vld [vmem:[#allocation5 + $0x188] sm:$0xff]  ;;  %v2898_v54 = vpack.c.bf16 %v153_v51, %v152_v50  ;;  %v155_v57 = vld [vmem:[#allocation5 + $0x118] sm:$0xff]  ;;  %v170_v59 = vld [vmem:[#allocation5 + $0x190] sm:$0xff] }
  0x44   :  { %2875 = vmatprep.subr.bf16.mxu1 %v2874_v17  ;;  %v2930_v55 = vpack.c.bf16 %v169_v53, %v168_v52  ;;  %v57_v58 = vld [vmem:[#allocation2 + $0x8] sm:$0xff]  ;;  %v171_v60 = vld [vmem:[#allocation5 + $0x198] sm:$0xff]  ;;  %v58_v62 = vld [vmem:[#allocation2 + $0x10] sm:$0xff]  ;;  %v2902_v63 = vpack.c.bf16 %v155_v57, %v154_v56 }
  0x45   :  { %v73_v61 = vld [vmem:[#allocation2 + $0x88] sm:$0xff]  ;;  %v74_v0 = vld [vmem:[#allocation2 + $0x90] sm:$0xff]  ;;  %v2934_v1 = vpack.c.bf16 %v171_v60, %v170_v59  ;;  %v59_v2 = vld [vmem:[#allocation2 + $0x18] sm:$0xff] }
  0x46   :  { %v75_v3 = vld [vmem:[#allocation2 + $0x98] sm:$0xff]  ;;  %v60_v4 = vld [vmem:[#allocation2 + $0x20] sm:$0xff]  ;;  %v157_v7 = vld [vmem:[#allocation5 + $0x128] sm:$0xff] }
  0x47   :  { %v76_v5 = vld [vmem:[#allocation2 + $0xa0] sm:$0xff]  ;;  %v173_v9 = vld [vmem:[#allocation5 + $0x1a8] sm:$0xff]  ;;  %v62_v14 = vld [vmem:[#allocation2 + $0x30] sm:$0xff] }
  0x48   :  { %v156_v6 = vld [vmem:[#allocation5 + $0x120] sm:$0xff]  ;;  %v61_v10 = vld [vmem:[#allocation2 + $0x28] sm:$0xff]  ;;  %v78_v15 = vld [vmem:[#allocation2 + $0xb0] sm:$0xff] }
  0x49   :  { %v172_v8 = vld [vmem:[#allocation5 + $0x1a0] sm:$0xff]  ;;  %v77_v11 = vld [vmem:[#allocation2 + $0xa8] sm:$0xff]  ;;  %v2906_v12 = vpack.c.bf16 %v157_v7, %v156_v6  ;;  %v158_v19 = vld [vmem:[#allocation5 + $0x130] sm:$0xff] }
  0x4a   :  { %2845 = vmatpush3.bf16.xpose.msra.mxu0 %v2842_v16  ;;  %v2938_v13 = vpack.c.bf16 %v173_v9, %v172_v8  ;;  %v63_v16 = vld [vmem:[#allocation2 + $0x38] sm:$0xff]  ;;  %v64_v18 = vld [vmem:[#allocation2 + $0x40] sm:$0xff]  ;;  %v174_v22 = vld [vmem:[#allocation5 + $0x1b0] sm:$0xff] }
  0x4b   :  { %2877 = vmatpush3.bf16.xpose.msra.mxu1 %v2874_v17  ;;  %2847 = vmatprep.subr.bf16.mxu0 %v2846_v24  ;;  %v79_v17 = vld [vmem:[#allocation2 + $0xb8] sm:$0xff]  ;;  %v80_v21 = vld [vmem:[#allocation2 + $0xc0] sm:$0xff]  ;;  %v81_v26 = vld [vmem:[#allocation2 + $0xc8] sm:$0xff] }
  0x4c   :  { %2879 = vmatprep.subr.bf16.mxu1 %v2878_v25  ;;  %v159_v20 = vld [vmem:[#allocation5 + $0x138] sm:$0xff]  ;;  %v66_v28 = vld [vmem:[#allocation2 + $0x50] sm:$0xff]  ;;  %v68_v32 = vld [vmem:[#allocation2 + $0x60] sm:$0xff] }
  0x4d   :  { %v175_v23 = vld [vmem:[#allocation5 + $0x1b8] sm:$0xff]  ;;  %v82_v29 = vld [vmem:[#allocation2 + $0xd0] sm:$0xff]  ;;  %v160_v33 = vld [vmem:[#allocation5 + $0x140] sm:$0xff] }
  0x4e   :  { %v2942_v27 = vpack.c.bf16 %v175_v23, %v174_v22  ;;  %v161_v34 = vld [vmem:[#allocation5 + $0x148] sm:$0xff]  ;;  %v84_v35 = vld [vmem:[#allocation2 + $0xe0] sm:$0xff]  ;;  %v71_v44 = vld [vmem:[#allocation2 + $0x78] sm:$0xff] }
  0x4f   :  { %v69_v38 = vld [vmem:[#allocation2 + $0x68] sm:$0xff]  ;;  %v2914_v39 = vpack.c.bf16 %v161_v34, %v160_v33  ;;  %v87_v45 = vld [vmem:[#allocation2 + $0xf8] sm:$0xff]  ;;  %v88_v46 = vld [vmem:[#allocation2 + $0x100] sm:$0xff] }
  0x50   :  { %v85_v40 = vld [vmem:[#allocation2 + $0xe8] sm:$0xff]  ;;  %v162_v47 = vld [vmem:[#allocation5 + $0x150] sm:$0xff]  ;;  %v179_v51 = vld [vmem:[#allocation5 + $0x1d8] sm:$0xff] }
  0x51   :  { %v178_v50 = vld [vmem:[#allocation5 + $0x1d0] sm:$0xff]  ;;  %v180_v56 = vld [vmem:[#allocation5 + $0x1e0] sm:$0xff]  ;;  %v181_v57 = vld [vmem:[#allocation5 + $0x1e8] sm:$0xff] }
  0x52   :  { %2849 = vmatpush3.bf16.xpose.msra.mxu0 %v2846_v24  ;;  %v65_v24 = vld [vmem:[#allocation2 + $0x48] sm:$0xff]  ;;  %v2950_v53 = vpack.c.bf16 %v179_v51, %v178_v50  ;;  %v2954_v59 = vpack.c.bf16 %v181_v57, %v180_v56  ;;  %v166_v60 = vld [vmem:[#allocation5 + $0x170] sm:$0xff]  ;;  %v91_v6 = vld [vmem:[#allocation2 + $0x118] sm:$0xff] }
  0x53   :  { %2881 = vmatpush3.bf16.xpose.msra.mxu1 %v2878_v25  ;;  %2851 = vmatprep.subr.bf16.mxu0 %v2850_v30  ;;  %v2910_v25 = vpack.c.bf16 %v159_v20, %v158_v19  ;;  %v107_v7 = vld [vmem:[#allocation2 + $0x198] sm:$0xff]  ;;  %v92_v8 = vld [vmem:[#allocation2 + $0x120] sm:$0xff]  ;;  %v113_v19 = vld [vmem:[#allocation2 + $0x1c8] sm:$0xff] }
  0x54   :  { %2883 = vmatprep.subr.bf16.mxu1 %v2882_v31  ;;  %v108_v9 = vld [vmem:[#allocation2 + $0x1a0] sm:$0xff]  ;;  %v98_v20 = vld [vmem:[#allocation2 + $0x150] sm:$0xff]  ;;  %v99_v22 = vld [vmem:[#allocation2 + $0x158] sm:$0xff] }
  0x55   :  { %v115_v23 = vld [vmem:[#allocation2 + $0x1d8] sm:$0xff] }
  0x5a   :  { %2853 = vmatpush3.bf16.xpose.msra.mxu0 %v2850_v30  ;;  %v67_v30 = vld [vmem:[#allocation2 + $0x58] sm:$0xff] }
  0x5b   :  { %2885 = vmatpush3.bf16.xpose.msra.mxu1 %v2882_v31  ;;  %2855 = vmatprep.subr.bf16.mxu0 %v2854_v36  ;;  %v83_v31 = vld [vmem:[#allocation2 + $0xd8] sm:$0xff] }
  0x5c   :  { %2887 = vmatprep.subr.bf16.mxu1 %v2886_v37 }
  0x62   :  { %2857 = vmatpush3.bf16.xpose.msra.mxu0 %v2854_v36  ;;  %v176_v36 = vld [vmem:[#allocation5 + $0x1c0] sm:$0xff] }
  0x63   :  { %2889 = vmatpush3.bf16.xpose.msra.mxu1 %v2886_v37  ;;  %2859 = vmatprep.subr.bf16.mxu0 %v2858_v42  ;;  %v177_v37 = vld [vmem:[#allocation5 + $0x1c8] sm:$0xff] }
  0x64   :  { %2891 = vmatprep.subr.bf16.mxu1 %v2890_v43  ;;  %v2946_v41 = vpack.c.bf16 %v177_v37, %v176_v36 }
  0x6a   :  { %2861 = vmatpush3.bf16.xpose.msra.mxu0 %v2858_v42  ;;  %v70_v42 = vld [vmem:[#allocation2 + $0x70] sm:$0xff] }
  0x6b   :  { %2893 = vmatpush3.bf16.xpose.msra.mxu1 %v2890_v43  ;;  %2863 = vmatprep.subr.bf16.mxu0 %v2862_v48  ;;  %v86_v43 = vld [vmem:[#allocation2 + $0xf0] sm:$0xff] }
  0x6c   :  { %2895 = vmatprep.subr.bf16.mxu1 %v2894_v49 }
  0x72   :  { %2865 = vmatpush3.bf16.xpose.msra.mxu0 %v2862_v48  ;;  %v163_v48 = vld [vmem:[#allocation5 + $0x158] sm:$0xff] }
  0x73   :  { %2897 = vmatpush3.bf16.xpose.msra.mxu1 %v2894_v49  ;;  %2899 = vmatprep.subr.bf16.mxu0 %v2898_v54  ;;  %v104_v49 = vld [vmem:[#allocation2 + $0x180] sm:$0xff]  ;;  %v2918_v52 = vpack.c.bf16 %v163_v48, %v162_v47 }
  0x74   :  { %2931 = vmatprep.subr.bf16.mxu1 %v2930_v55 }
  0x79   :  { %2419 = vmatmul.mubr.f32.vlgmr.msra.gmra.mrb[0].mxu0 %v57_v58 }
  0x7a   :  { %2475 = vmatmul.mubr.f32.vlgmr.msra.gmra.mrb[0].mxu1 %v73_v61  ;;  %2901 = vmatpush3.bf16.xpose.msra.mxu0 %v2898_v54  ;;  %v164_v54 = vld [vmem:[#allocation5 + $0x160] sm:$0xff]  ;;  %v167_v61 = vld [vmem:[#allocation5 + $0x178] sm:$0xff] }
  0x7b   :  { %2933 = vmatpush3.bf16.xpose.msra.mxu1 %v2930_v55  ;;  %2421 = vmatprep.mubr.f32.mxu0 %v58_v62  ;;  %v165_v55 = vld [vmem:[#allocation5 + $0x168] sm:$0xff]  ;;  %v182_v62 = vld [vmem:[#allocation5 + $0x1f0] sm:$0xff] }
  0x7c   :  { %2477 = vmatprep.mubr.f32.mxu1 %v74_v0  ;;  %2903 = vmatprep.subr.bf16.mxu0 %v2902_v63  ;;  %v2922_v58 = vpack.c.bf16 %v165_v55, %v164_v54  ;;  %v2926_v0 = vpack.c.bf16 %v167_v61, %v166_v60 }
  0x7d   :  { %2422 = vmatmul.mubr.f32.gmra.mrb[2].mxu0 %v59_v2  ;;  %2935 = vmatprep.subr.bf16.mxu1 %v2934_v1  ;;  %v89_v2 = vld [vmem:[#allocation2 + $0x108] sm:$0xff] }
  0x7e   :  { %2478 = vmatmul.mubr.f32.gmra.mrb[2].mxu1 %v75_v3  ;;  %2424 = vmatprep.mubr.f32.mxu0 %v60_v4  ;;  %v105_v3 = vld [vmem:[#allocation2 + $0x188] sm:$0xff]  ;;  %v90_v4 = vld [vmem:[#allocation2 + $0x110] sm:$0xff] }
  0x7f   :  { %2480 = vmatprep.mubr.f32.mxu1 %v76_v5  ;;  %v106_v5 = vld [vmem:[#allocation2 + $0x190] sm:$0xff] }
  0x81   :  { %2425 = vmatmul.mubr.f32.gmra.mrb[4].mxu0 %v61_v10  ;;  %v93_v10 = vld [vmem:[#allocation2 + $0x128] sm:$0xff] }
  0x82   :  { %2905 = vmatpush3.bf16.xpose.msra.mxu0 %v2902_v63  ;;  %2481 = vmatmul.mubr.f32.gmra.mrb[4].mxu1 %v77_v11  ;;  %v183_v63 = vld [vmem:[#allocation5 + $0x1f8] sm:$0xff]  ;;  %v109_v11 = vld [vmem:[#allocation2 + $0x1a8] sm:$0xff] }
  0x83   :  { %2937 = vmatpush3.bf16.xpose.msra.mxu1 %v2934_v1  ;;  %2907 = vmatprep.subr.bf16.mxu0 %v2906_v12  ;;  %v2958_v1 = vpack.c.bf16 %v183_v63, %v182_v62 }
  0x84   :  { %2939 = vmatprep.subr.bf16.mxu1 %v2938_v13  ;;  %2427 = vmatprep.mubr.f32.mxu0 %v62_v14  ;;  %v95_v14 = vld [vmem:[#allocation2 + $0x138] sm:$0xff] }
  0x85   :  { %2483 = vmatprep.mubr.f32.mxu1 %v78_v15  ;;  %2428 = vmatmul.mubr.f32.gmra.mrb[6].mxu0 %v63_v16  ;;  %v111_v15 = vld [vmem:[#allocation2 + $0x1b8] sm:$0xff]  ;;  %v96_v16 = vld [vmem:[#allocation2 + $0x140] sm:$0xff] }
  0x86   :  { %2484 = vmatmul.mubr.f32.gmra.mrb[6].mxu1 %v79_v17  ;;  %2430 = vmatprep.mubr.f32.mxu0 %v64_v18  ;;  %v112_v17 = vld [vmem:[#allocation2 + $0x1c0] sm:$0xff]  ;;  %v97_v18 = vld [vmem:[#allocation2 + $0x148] sm:$0xff] }
  0x87   :  { %2486 = vmatprep.mubr.f32.mxu1 %v80_v21  ;;  %v114_v21 = vld [vmem:[#allocation2 + $0x1d0] sm:$0xff] }
  0x89   :  { %2431 = vmatmul.mubr.f32.gmra.mrb[8].mxu0 %v65_v24  ;;  %v100_v24 = vld [vmem:[#allocation2 + $0x160] sm:$0xff] }
  0x8a   :  { %2909 = vmatpush3.bf16.xpose.msra.mxu0 %v2906_v12  ;;  %2487 = vmatmul.mubr.f32.gmra.mrb[8].mxu1 %v81_v26  ;;  %v94_v12 = vld [vmem:[#allocation2 + $0x130] sm:$0xff]  ;;  %v101_v26 = vld [vmem:[#allocation2 + $0x168] sm:$0xff] }
  0x8b   :  { %2941 = vmatpush3.bf16.xpose.msra.mxu1 %v2938_v13  ;;  %2911 = vmatprep.subr.bf16.mxu0 %v2910_v25  ;;  %v110_v13 = vld [vmem:[#allocation2 + $0x1b0] sm:$0xff] }
  0x8c   :  { %2943 = vmatprep.subr.bf16.mxu1 %v2942_v27  ;;  %2433 = vmatprep.mubr.f32.mxu0 %v66_v28  ;;  %v102_v28 = vld [vmem:[#allocation2 + $0x170] sm:$0xff] }
  0x8d   :  { %2489 = vmatprep.mubr.f32.mxu1 %v82_v29  ;;  %2434 = vmatmul.mubr.f32.gmra.mrb[10].mxu0 %v67_v30  ;;  %v118_v29 = vld [vmem:[#allocation2 + $0x1f0] sm:$0xff]  ;;  %v103_v30 = vld [vmem:[#allocation2 + $0x178] sm:$0xff] }
  0x8e   :  { %2490 = vmatmul.mubr.f32.gmra.mrb[10].mxu1 %v83_v31  ;;  %2436 = vmatprep.mubr.f32.mxu0 %v68_v32  ;;  %v119_v31 = vld [vmem:[#allocation2 + $0x1f8] sm:$0xff] }
  0x8f   :  { %2492 = vmatprep.mubr.f32.mxu1 %v84_v35 }
  0x91   :  { %2437 = vmatmul.mubr.f32.gmra.mrb[12].mxu0 %v69_v38 }
  0x92   :  { %2913 = vmatpush3.bf16.xpose.msra.mxu0 %v2910_v25  ;;  %2493 = vmatmul.mubr.f32.gmra.mrb[12].mxu1 %v85_v40  ;;  %v116_v25 = vld [vmem:[#allocation2 + $0x1e0] sm:$0xff] }
  0x93   :  { %2945 = vmatpush3.bf16.xpose.msra.mxu1 %v2942_v27  ;;  %2915 = vmatprep.subr.bf16.mxu0 %v2914_v39  ;;  %v117_v27 = vld [vmem:[#allocation2 + $0x1e8] sm:$0xff] }
  0x94   :  { %2947 = vmatprep.subr.bf16.mxu1 %v2946_v41  ;;  %2439 = vmatprep.mubr.f32.mxu0 %v70_v42 }
  0x95   :  { %2495 = vmatprep.mubr.f32.mxu1 %v86_v43  ;;  %2440 = vmatmul.mubr.f32.gmra.mrb[14].mxu0 %v71_v44 }
  0x96   :  { %2496 = vmatmul.mubr.f32.gmra.mrb[14].mxu1 %v87_v45  ;;  %2530 = vmatprep.mubr.f32.mxu0 %v88_v46 }
  0x97   :  { %2586 = vmatprep.mubr.f32.mxu1 %v104_v49 }
  0x9a   :  { %2917 = vmatpush3.bf16.xpose.msra.mxu0 %v2914_v39 }
  0x9b   :  { %2949 = vmatpush3.bf16.xpose.msra.mxu1 %v2946_v41  ;;  %2919 = vmatprep.subr.bf16.mxu0 %v2918_v52 }
  0x9c   :  { %2951 = vmatprep.subr.bf16.mxu1 %v2950_v53 }
  0xa2   :  { %2921 = vmatpush3.bf16.xpose.msra.mxu0 %v2918_v52 }
  0xa3   :  { %2953 = vmatpush3.bf16.xpose.msra.mxu1 %v2950_v53  ;;  %2923 = vmatprep.subr.bf16.mxu0 %v2922_v58 }
  0xa4   :  { %2955 = vmatprep.subr.bf16.mxu1 %v2954_v59 }
  0xaa   :  { %2925 = vmatpush3.bf16.xpose.msra.mxu0 %v2922_v58 }
  0xab   :  { %2957 = vmatpush3.bf16.xpose.msra.mxu1 %v2954_v59  ;;  %2927 = vmatprep.subr.bf16.mxu0 %v2926_v0 }
  0xac   :  { %2959 = vmatprep.subr.bf16.mxu1 %v2958_v1 }
  0xb2   :  { %2929 = vmatpush3.bf16.xpose.msra.mxu0 %v2926_v0 }
  0xb3   :  { %2961 = vmatpush3.bf16.xpose.msra.mxu1 %v2958_v1 }
  0xb9   :  { %2531 = vmatmul.mubr.f32.vlgmr.msra.gmra.mrb[16].mxu0 %v89_v2 }
  0xba   :  { %2587 = vmatmul.mubr.f32.vlgmr.msra.gmra.mrb[16].mxu1 %v105_v3  ;;  %2533 = vmatprep.mubr.f32.mxu0 %v90_v4 }
  0xbb   :  { %2589 = vmatprep.mubr.f32.mxu1 %v106_v5 }
  0xbd   :  { %2534 = vmatmul.mubr.f32.gmra.mrb[18].mxu0 %v91_v6 }
  0xbe   :  { %2590 = vmatmul.mubr.f32.gmra.mrb[18].mxu1 %v107_v7  ;;  %2536 = vmatprep.mubr.f32.mxu0 %v92_v8 }
  0xbf   :  { %2592 = vmatprep.mubr.f32.mxu1 %v108_v9 }
  0xc1   :  { %2537 = vmatmul.mubr.f32.gmra.mrb[20].mxu0 %v93_v10 }
  0xc2   :  { %2593 = vmatmul.mubr.f32.gmra.mrb[20].mxu1 %v109_v11  ;;  %2539 = vmatprep.mubr.f32.mxu0 %v94_v12 }
  0xc3   :  { %2595 = vmatprep.mubr.f32.mxu1 %v110_v13 }
  0xc5   :  { %2540 = vmatmul.mubr.f32.gmra.mrb[22].mxu0 %v95_v14 }
  0xc6   :  { %2596 = vmatmul.mubr.f32.gmra.mrb[22].mxu1 %v111_v15  ;;  %2542 = vmatprep.mubr.f32.mxu0 %v96_v16 }
  0xc7   :  { %2598 = vmatprep.mubr.f32.mxu1 %v112_v17 }
  0xc9   :  { %2543 = vmatmul.mubr.f32.gmra.mrb[24].mxu0 %v97_v18 }
  0xca   :  { %2599 = vmatmul.mubr.f32.gmra.mrb[24].mxu1 %v113_v19  ;;  %2545 = vmatprep.mubr.f32.mxu0 %v98_v20 }
  0xcb   :  { %2601 = vmatprep.mubr.f32.mxu1 %v114_v21 }
  0xcd   :  { %2546 = vmatmul.mubr.f32.gmra.mrb[26].mxu0 %v99_v22 }
  0xce   :  { %2602 = vmatmul.mubr.f32.gmra.mrb[26].mxu1 %v115_v23  ;;  %2548 = vmatprep.mubr.f32.mxu0 %v100_v24 }
  0xcf   :  { %2604 = vmatprep.mubr.f32.mxu1 %v116_v25 }
  0xd1   :  { %2549 = vmatmul.mubr.f32.gmra.mrb[28].mxu0 %v101_v26 }
  0xd2   :  { %2605 = vmatmul.mubr.f32.gmra.mrb[28].mxu1 %v117_v27  ;;  %2551 = vmatprep.mubr.f32.mxu0 %v102_v28 }
  0xd3   :  { %2607 = vmatprep.mubr.f32.mxu1 %v118_v29 }
  0xd5   :  { %2552 = vmatmul.mubr.f32.gmra.mrb[30].mxu0 %v103_v30 }
  0xd6   :  { %2608 = vmatmul.mubr.f32.gmra.mrb[30].mxu1 %v119_v31 }
 0x14c   :  { %v2420_v32 = vpop.f32.mrb[0].mxu0 }
 0x14d   :  { %v3524_v33 = vmul.f32 0.088388346, %v2420_v32  ;;  %v314_v34 = vpop.f32.mrb[1].mxu0  ;;  %v2476_v35 = vpop.f32.mrb[0].mxu1 }
 0x14e   :  { %v3526_v36 = vmul.f32 0.088388346, %v314_v34  ;;  %v459_v37 = vpop.f32.mrb[1].mxu1  ;;  %v3530_v39 = vmul.f32 0.088388346, %v2476_v35 }
 0x14f   :  { %894 = vmax.xlane.f32.xlu1 %v3524_v33  ;;  %v3532_v42 = vmul.f32 0.088388346, %v459_v37 }
 0x150   :  { %892 = vmax.xlane.f32.xlu0 %v3526_v36  ;;  %v2423_v38 = vpop.f32.mrb[2].mxu0 }
 0x151   :  { %v2479_v40 = vpop.f32.mrb[2].mxu1  ;;  %v324_v41 = vpop.f32.mrb[3].mxu0  ;;  %v3538_v45 = vmul.f32 0.088388346, %v2423_v38 }
 0x152   :  { %v469_v43 = vpop.f32.mrb[3].mxu1  ;;  %v3535_v44 = vmul.f32 0.088388346, %v2479_v40  ;;  %v3544_v54 = vmul.f32 0.088388346, %v324_v41 }
 0x153   :  { %926 = vmax.xlane.f32.xlu1 %v3530_v39  ;;  %v3542_v51 = vmul.f32 0.088388346, %v469_v43 }
 0x154   :  { %924 = vmax.xlane.f32.xlu0 %v3532_v42  ;;  %v2426_v46 = vpop.f32.mrb[4].mxu0 }
 0x155   :  { %v2482_v47 = vpop.f32.mrb[4].mxu1  ;;  %v334_v48 = vpop.f32.mrb[5].mxu0  ;;  %v3550_v57 = vmul.f32 0.088388346, %v2426_v46 }
 0x156   :  { %v479_v49 = vpop.f32.mrb[5].mxu1  ;;  %v3547_v56 = vmul.f32 0.088388346, %v2482_v47  ;;  %v3556_v2 = vmul.f32 0.088388346, %v334_v48 }
 0x157   :  { %930 = vmax.xlane.f32.xlu1 %v3535_v44  ;;  %v3554_v63 = vmul.f32 0.088388346, %v479_v49 }
 0x158   :  { %898 = vmax.xlane.f32.xlu0 %v3538_v45  ;;  %v2429_v50 = vpop.f32.mrb[6].mxu0 }
 0x159   :  { %v2485_v52 = vpop.f32.mrb[6].mxu1  ;;  %v344_v53 = vpop.f32.mrb[7].mxu0  ;;  %v3562_v5 = vmul.f32 0.088388346, %v2429_v50 }
 0x15a   :  { %v489_v55 = vpop.f32.mrb[7].mxu1  ;;  %v3559_v4 = vmul.f32 0.088388346, %v2485_v52  ;;  %v3568_v14 = vmul.f32 0.088388346, %v344_v53 }
 0x15b   :  { %928 = vmax.xlane.f32.xlu1 %v3542_v51  ;;  %v3566_v11 = vmul.f32 0.088388346, %v489_v55 }
 0x15c   :  { %896 = vmax.xlane.f32.xlu0 %v3544_v54  ;;  %v2432_v58 = vpop.f32.mrb[8].mxu0 }
 0x15d   :  { %v2488_v59 = vpop.f32.mrb[8].mxu1  ;;  %v354_v60 = vpop.f32.mrb[9].mxu0  ;;  %v3574_v17 = vmul.f32 0.088388346, %v2432_v58 }
 0x15e   :  { %v499_v61 = vpop.f32.mrb[9].mxu1  ;;  %v3571_v16 = vmul.f32 0.088388346, %v2488_v59  ;;  %v3580_v19 = vmul.f32 0.088388346, %v354_v60 }
 0x15f   :  { %934 = vmax.xlane.f32.xlu1 %v3547_v56  ;;  %v3578_v18 = vmul.f32 0.088388346, %v499_v61 }
 0x160   :  { %902 = vmax.xlane.f32.xlu0 %v3550_v57  ;;  %v2435_v62 = vpop.f32.mrb[10].mxu0 }
 0x161   :  { %v2491_v0 = vpop.f32.mrb[10].mxu1  ;;  %v364_v1 = vpop.f32.mrb[11].mxu0  ;;  %v3586_v21 = vmul.f32 0.088388346, %v2435_v62 }
 0x162   :  { %v509_v3 = vpop.f32.mrb[11].mxu1  ;;  %v3583_v20 = vmul.f32 0.088388346, %v2491_v0  ;;  %v3592_v23 = vmul.f32 0.088388346, %v364_v1 }
 0x163   :  { %932 = vmax.xlane.f32.xlu1 %v3554_v63  ;;  %v3590_v22 = vmul.f32 0.088388346, %v509_v3 }
 0x164   :  { %900 = vmax.xlane.f32.xlu0 %v3556_v2  ;;  %v2438_v6 = vpop.f32.mrb[12].mxu0 }
 0x165   :  { %v2494_v7 = vpop.f32.mrb[12].mxu1  ;;  %v374_v8 = vpop.f32.mrb[13].mxu0  ;;  %v3598_v25 = vmul.f32 0.088388346, %v2438_v6 }
 0x166   :  { %v519_v9 = vpop.f32.mrb[13].mxu1  ;;  %v3595_v24 = vmul.f32 0.088388346, %v2494_v7  ;;  %v3604_v27 = vmul.f32 0.088388346, %v374_v8 }
 0x167   :  { %938 = vmax.xlane.f32.xlu1 %v3559_v4  ;;  %v3602_v26 = vmul.f32 0.088388346, %v519_v9 }
 0x168   :  { %906 = vmax.xlane.f32.xlu0 %v3562_v5  ;;  %v2441_v10 = vpop.f32.mrb[14].mxu0 }
 0x169   :  { %v2497_v12 = vpop.f32.mrb[14].mxu1  ;;  %v384_v13 = vpop.f32.mrb[15].mxu0  ;;  %v3610_v29 = vmul.f32 0.088388346, %v2441_v10 }
 0x16a   :  { %v529_v15 = vpop.f32.mrb[15].mxu1  ;;  %v3607_v28 = vmul.f32 0.088388346, %v2497_v12  ;;  %v3616_v31 = vmul.f32 0.088388346, %v384_v13 }
 0x16b   :  { %936 = vmax.xlane.f32.xlu1 %v3566_v11  ;;  %v3614_v30 = vmul.f32 0.088388346, %v529_v15 }
 0x16c   :  { %904 = vmax.xlane.f32.xlu0 %v3568_v14 }
 0x16f   :  { %942 = vmax.xlane.f32.xlu1 %v3571_v16 }
 0x170   :  { %910 = vmax.xlane.f32.xlu0 %v3574_v17 }
 0x173   :  { %940 = vmax.xlane.f32.xlu1 %v3578_v18 }
 0x174   :  { %908 = vmax.xlane.f32.xlu0 %v3580_v19 }
 0x177   :  { %946 = vmax.xlane.f32.xlu1 %v3583_v20 }
 0x178   :  { %914 = vmax.xlane.f32.xlu0 %v3586_v21 }
 0x17b   :  { %944 = vmax.xlane.f32.xlu1 %v3590_v22 }
 0x17c   :  { %912 = vmax.xlane.f32.xlu0 %v3592_v23 }
 0x17f   :  { %950 = vmax.xlane.f32.xlu1 %v3595_v24 }
 0x180   :  { %918 = vmax.xlane.f32.xlu0 %v3598_v25 }
 0x183   :  { %948 = vmax.xlane.f32.xlu1 %v3602_v26 }
 0x184   :  { %916 = vmax.xlane.f32.xlu0 %v3604_v27 }
 0x187   :  { %954 = vmax.xlane.f32.xlu1 %v3607_v28 }
 0x188   :  { %922 = vmax.xlane.f32.xlu0 %v3610_v29 }
 0x18b   :  { %952 = vmax.xlane.f32.xlu1 %v3614_v30 }
 0x18c   :  { %920 = vmax.xlane.f32.xlu0 %v3616_v31  ;;  %v2532_v32 = vpop.f32.mrb[16].mxu0 }
 0x18d   :  { %v2588_v34 = vpop.f32.mrb[16].mxu1  ;;  %v3620_v35 = vmul.f32 0.088388346, %v2532_v32  ;;  %v604_v37 = vpop.f32.mrb[17].mxu0 }
 0x18e   :  { %v3622_v38 = vmul.f32 0.088388346, %v2588_v34  ;;  %v749_v40 = vpop.f32.mrb[17].mxu1  ;;  %v3626_v47 = vmul.f32 0.088388346, %v604_v37 }
 0x18f   :  { %v3628_v48 = vmul.f32 0.088388346, %v749_v40 }
 0x190   :  { %990 = vmax.xlane.f32.xlu1 %v3622_v38  ;;  %958 = vmax.xlane.f32.xlu0 %v3620_v35  ;;  %v2535_v41 = vpop.f32.mrb[18].mxu0 }
 0x191   :  { %v2591_v43 = vpop.f32.mrb[18].mxu1  ;;  %v614_v46 = vpop.f32.mrb[19].mxu0  ;;  %v3634_v52 = vmul.f32 0.088388346, %v2535_v41 }
 0x192   :  { %v759_v49 = vpop.f32.mrb[19].mxu1  ;;  %v3631_v50 = vmul.f32 0.088388346, %v2591_v43  ;;  %v3638_v0 = vmul.f32 0.088388346, %v614_v46 }
 0x193   :  { %v3640_v1 = vmul.f32 0.088388346, %v759_v49 }
 0x194   :  { %988 = vmax.xlane.f32.xlu1 %v3628_v48  ;;  %956 = vmax.xlane.f32.xlu0 %v3626_v47  ;;  %v2538_v53 = vpop.f32.mrb[20].mxu0 }
 0x195   :  { %v2594_v55 = vpop.f32.mrb[20].mxu1  ;;  %v624_v58 = vpop.f32.mrb[21].mxu0  ;;  %v3646_v7 = vmul.f32 0.088388346, %v2538_v53 }
 0x196   :  { %v769_v59 = vpop.f32.mrb[21].mxu1  ;;  %v3643_v6 = vmul.f32 0.088388346, %v2594_v55  ;;  %v3650_v34 = vmul.f32 0.088388346, %v624_v58 }
 0x197   :  { %4099 = vst [vmem:[#allocation13_spill] sm:$0xff] %v3646_v7  ;;  %v3652_v37 = vmul.f32 0.088388346, %v769_v59 }
 0x198   :  { %994 = vmax.xlane.f32.xlu1 %v3631_v50  ;;  %962 = vmax.xlane.f32.xlu0 %v3634_v52  ;;  %v2541_v60 = vpop.f32.mrb[22].mxu0  ;;  %4098 = vst [vmem:[#allocation12_spill] sm:$0xff] %v3643_v6  ;;  %4100 = vst [vmem:[#allocation14_spill] sm:$0xff] %v3650_v34 }
 0x199   :  { %v2597_v61 = vpop.f32.mrb[22].mxu1  ;;  %v634_v62 = vpop.f32.mrb[23].mxu0  ;;  %4101 = vst [vmem:[#allocation15_spill] sm:$0xff] %v3652_v37  ;;  %v3658_v43 = vmul.f32 0.088388346, %v2541_v60 }
 0x19a   :  { %v779_v3 = vpop.f32.mrb[23].mxu1  ;;  %v3655_v41 = vmul.f32 0.088388346, %v2597_v61 }
 0x19b   :  { %4103 = vst [vmem:[#allocation17_spill] sm:$0xff] %v3658_v43 }
 0x19c   :  { %992 = vmax.xlane.f32.xlu1 %v3640_v1  ;;  %960 = vmax.xlane.f32.xlu0 %v3638_v0  ;;  %v2544_v8 = vpop.f32.mrb[24].mxu0  ;;  %4102 = vst [vmem:[#allocation16_spill] sm:$0xff] %v3655_v41 }
 0x19d   :  { %v2600_v9 = vpop.f32.mrb[24].mxu1  ;;  %v644_v10 = vpop.f32.mrb[25].mxu0 }
 0x19e   :  { %v789_v12 = vpop.f32.mrb[25].mxu1  ;;  %v3667_v60 = vmul.f32 0.088388346, %v2600_v9 }
 0x1a0   :  { %998 = vmax.xlane.f32.xlu1 %v3643_v6  ;;  %966 = vmax.xlane.f32.xlu0 %v3646_v7  ;;  %v2547_v13 = vpop.f32.mrb[26].mxu0  ;;  %v3662_v6 = vmul.f32 0.088388346, %v634_v62 }
 0x1a1   :  { %v2603_v15 = vpop.f32.mrb[26].mxu1  ;;  %v654_v32 = vpop.f32.mrb[27].mxu0 }
 0x1a2   :  { %v799_v40 = vpop.f32.mrb[27].mxu1  ;;  %v3679_v62 = vmul.f32 0.088388346, %v2603_v15 }
 0x1a3   :  { %v3688_v9 = vmul.f32 0.088388346, %v799_v40 }
 0x1a4   :  { %996 = vmax.xlane.f32.xlu1 %v3652_v37  ;;  %964 = vmax.xlane.f32.xlu0 %v3650_v34  ;;  %v2550_v46 = vpop.f32.mrb[28].mxu0  ;;  %v3664_v37 = vmul.f32 0.088388346, %v779_v3  ;;  %v3670_v34 = vmul.f32 0.088388346, %v2544_v8 }
 0x1a5   :  { %v2606_v49 = vpop.f32.mrb[28].mxu1  ;;  %v664_v53 = vpop.f32.mrb[29].mxu0  ;;  %v3682_v3 = vmul.f32 0.088388346, %v2547_v13  ;;  %v3686_v8 = vmul.f32 0.088388346, %v654_v32 }
 0x1a6   :  { %v809_v55 = vpop.f32.mrb[29].mxu1  ;;  %v3698_v13 = vmul.f32 0.088388346, %v664_v53 }
 0x1a7   :  { %v3700_v15 = vmul.f32 0.088388346, %v809_v55 }
 0x1a8   :  { %1002 = vmax.xlane.f32.xlu1 %v3655_v41  ;;  %970 = vmax.xlane.f32.xlu0 %v3658_v43  ;;  %v2553_v58 = vpop.f32.mrb[30].mxu0  ;;  %v3674_v43 = vmul.f32 0.088388346, %v644_v10  ;;  %v3676_v41 = vmul.f32 0.088388346, %v789_v12  ;;  %4106 = vst [vmem:[#allocation20_spill] sm:$0xff] %v3698_v13 }
 0x1a9   :  { %v2609_v59 = vpop.f32.mrb[30].mxu1  ;;  %v674_v7 = vpop.f32.mrb[31].mxu0  ;;  %v3691_v10 = vmul.f32 0.088388346, %v2606_v49  ;;  %v3694_v12 = vmul.f32 0.088388346, %v2550_v46 }
 0x1aa   :  { %v819_v61 = vpop.f32.mrb[31].mxu1  ;;  %4107 = vst [vmem:[#allocation21_spill] sm:$0xff] %v3700_v15  ;;  %v3703_v32 = vmul.f32 0.088388346, %v2609_v59  ;;  %v3706_v40 = vmul.f32 0.088388346, %v2553_v58 }
 0x1ab   :  { %4104 = vst [vmem:[#allocation18_spill] sm:$0xff] %v3691_v10  ;;  %4105 = vst [vmem:[#allocation19_spill] sm:$0xff] %v3694_v12  ;;  %v3710_v46 = vmul.f32 0.088388346, %v674_v7  ;;  %v3712_v49 = vmul.f32 0.088388346, %v819_v61 }
 0x1ac   :  { %1000 = vmax.xlane.f32.xlu1 %v3664_v37  ;;  %968 = vmax.xlane.f32.xlu0 %v3662_v6  ;;  %4108 = vst [vmem:[#allocation22_spill] sm:$0xff] %v3703_v32  ;;  %4109 = vst [vmem:[#allocation23_spill] sm:$0xff] %v3706_v40 }
 0x1ad   :  { %4110 = vst [vmem:[#allocation24_spill] sm:$0xff] %v3710_v46  ;;  %4111 = vst [vmem:[#allocation25_spill] sm:$0xff] %v3712_v49 }
 0x1b0   :  { %1006 = vmax.xlane.f32.xlu1 %v3667_v60  ;;  %974 = vmax.xlane.f32.xlu0 %v3670_v34 }
 0x1b4   :  { %1004 = vmax.xlane.f32.xlu1 %v3676_v41  ;;  %972 = vmax.xlane.f32.xlu0 %v3674_v43 }
 0x1b8   :  { %1010 = vmax.xlane.f32.xlu1 %v3679_v62  ;;  %978 = vmax.xlane.f32.xlu0 %v3682_v3 }
 0x1bc   :  { %1008 = vmax.xlane.f32.xlu1 %v3688_v9  ;;  %976 = vmax.xlane.f32.xlu0 %v3686_v8 }
 0x1c0   :  { %1014 = vmax.xlane.f32.xlu1 %v3691_v10  ;;  %982 = vmax.xlane.f32.xlu0 %v3694_v12 }
 0x1c4   :  { %1012 = vmax.xlane.f32.xlu1 %v3700_v15  ;;  %980 = vmax.xlane.f32.xlu0 %v3698_v13 }
 0x1c8   :  { %1018 = vmax.xlane.f32.xlu1 %v3703_v32  ;;  %986 = vmax.xlane.f32.xlu0 %v3706_v40 }
 0x1cc   :  { %1016 = vmax.xlane.f32.xlu1 %v3712_v49  ;;  %984 = vmax.xlane.f32.xlu0 %v3710_v46 }
 0x1dc   :  { %v895_v53 = vpop.xlane.xlu1 %894 }
 0x1dd   :  { %v1021_v55 = vsub.f32 %v3524_v33, %v895_v53  ;;  %v893_v59 = vpop.xlane.xlu0 %892 }
 0x1de   :  { %v1020_v13 = vsub.f32 %v3526_v36, %v893_v59 }
 0x1df   :  { %v1086_v58 = vmul.f32 1.442695, %v1021_v55 }
 0x1e0   :  { %v1084_v15 = vmul.f32 1.442695, %v1020_v13  ;;  %v927_v12 = vpop.xlane.xlu1 %926 }
 0x1e1   :  { %3096 = vpow2.f32 %v1086_v58  ;;  %v1037_v40 = vsub.f32 %v3530_v39, %v927_v12  ;;  %v925_v7 = vpop.xlane.xlu0 %924  ;;  %v184_v12 = vld [vmem:[#allocation7] sm:$0xff] }
 0x1e2   :  { %v1036_v61 = vsub.f32 %v3532_v42, %v925_v7  ;;  %3098 = vpow2.f32 %v1084_v15  ;;  %v185_v15 = vld [vmem:[#allocation7 + $0x8] sm:$0xff]  ;;  %v187_v7 = vld [vmem:[#allocation7 + $0x18] sm:$0xff] }
 0x1e3   :  { %v1118_v32 = vmul.f32 1.442695, %v1037_v40 }
 0x1e4   :  { %v931_v49 = vpop.xlane.xlu1 %930  ;;  %v1116_v46 = vmul.f32 1.442695, %v1036_v61  ;;  %v200_v61 = vld [vmem:[#allocation7 + $0x80] sm:$0xff] }
 0x1e5   :  { %3100 = vpow2.f32 %v1118_v32  ;;  %v1039_v10 = vsub.f32 %v3535_v44, %v931_v49  ;;  %v899_v33 = vpop.xlane.xlu0 %898  ;;  %v2962_v32 = vpack.c.bf16 %v185_v15, %v184_v12  ;;  %v186_v49 = vld [vmem:[#allocation7 + $0x10] sm:$0xff] }
 0x1e6   :  { %v1023_v53 = vsub.f32 %v3538_v45, %v899_v33  ;;  %3102 = vpow2.f32 %v1116_v46  ;;  %v202_v12 = vld [vmem:[#allocation7 + $0x90] sm:$0xff] }
 0x1e7   :  { %v1122_v13 = vmul.f32 1.442695, %v1039_v10  ;;  %2963 = vmatprep.subr.bf16.mxu0 %v2962_v32  ;;  %v190_v15 = vld [vmem:[#allocation7 + $0x30] sm:$0xff] }
 0x1e8   :  { %v1090_v36 = vmul.f32 1.442695, %v1023_v53  ;;  %v929_v55 = vpop.xlane.xlu1 %928  ;;  %2965 = vmatpush3.bf16.msra.mxu0 %v2962_v32  ;;  %v2966_v53 = vpack.c.bf16 %v187_v7, %v186_v49  ;;  %v191_v49 = vld [vmem:[#allocation7 + $0x38] sm:$0xff]  ;;  %v204_v7 = vld [vmem:[#allocation7 + $0xa0] sm:$0xff] }
 0x1e9   :  { %v1038_v59 = vsub.f32 %v3542_v51, %v929_v55  ;;  %v897_v39 = vpop.xlane.xlu0 %896  ;;  %v188_v55 = vld [vmem:[#allocation7 + $0x20] sm:$0xff] }
 0x1ea   :  { %3104 = vpow2.f32 %v1090_v36  ;;  %v1022_v42 = vsub.f32 %v3544_v54, %v897_v39  ;;  %v201_v36 = vld [vmem:[#allocation7 + $0x88] sm:$0xff]  ;;  %2967 = vmatprep.subr.bf16.mxu0 %v2966_v53 }
 0x1eb   :  { %v3724_v40 = vpop.eup %3096  ;;  %3106 = vpow2.f32 %v1122_v13  ;;  %v1120_v45 = vmul.f32 1.442695, %v1038_v59  ;;  %v189_v13 = vld [vmem:[#allocation7 + $0x28] sm:$0xff]  ;;  %v2994_v39 = vpack.c.bf16 %v201_v36, %v200_v61  ;;  %v2974_v36 = vpack.c.bf16 %v191_v49, %v190_v15  ;;  %v207_v49 = vld [vmem:[#allocation7 + $0xb8] sm:$0xff] }
 0x1ec   :  { %v1088_v58 = vmul.f32 1.442695, %v1022_v42  ;;  %v935_v44 = vpop.xlane.xlu1 %934  ;;  %1214 = vadd.xlane.f32.xlu0 %v3724_v40  ;;  %v3728_v51 = vpop.eup %3098  ;;  %v2970_v42 = vpack.c.bf16 %v189_v13, %v188_v55  ;;  %2969 = vmatpush3.bf16.msra.mxu0 %v2966_v53 }
 0x1ed   :  { %v1041_v46 = vsub.f32 %v3547_v56, %v935_v44  ;;  %v903_v10 = vpop.xlane.xlu0 %902  ;;  %2995 = vmatprep.subr.bf16.mxu1 %v2994_v39 }
 0x1ee   :  { %3108 = vpow2.f32 %v1088_v58  ;;  %v1025_v54 = vsub.f32 %v3550_v57, %v903_v10  ;;  %v203_v57 = vld [vmem:[#allocation7 + $0x98] sm:$0xff]  ;;  %2997 = vmatpush3.bf16.msra.mxu1 %v2994_v39  ;;  %2971 = vmatprep.subr.bf16.mxu0 %v2970_v42 }
 0x1ef   :  { %v3731_v33 = vpop.eup %3100  ;;  %3110 = vpow2.f32 %v1120_v45  ;;  %v1126_v32 = vmul.f32 1.442695, %v1041_v46  ;;  %v2998_v10 = vpack.c.bf16 %v203_v57, %v202_v12 }
 0x1f0   :  { %4112 = vst [vmem:[#allocation26_spill] sm:$0xff] %v3731_v33  ;;  %v1094_v59 = vmul.f32 1.442695, %v1025_v54  ;;  %1246 = vadd.xlane.f32.xlu1 %v3731_v33  ;;  %v933_v56 = vpop.xlane.xlu1 %932  ;;  %1212 = vadd.xlane.f32.xlu0 %v3728_v51  ;;  %v205_v54 = vld [vmem:[#allocation7 + $0xa8] sm:$0xff]  ;;  %v3737_v61 = vpop.eup %3102 }
 0x1f1   :  { %v1040_v58 = vsub.f32 %v3554_v63, %v933_v56  ;;  %v901_v44 = vpop.xlane.xlu0 %900  ;;  %2999 = vmatprep.subr.bf16.mxu1 %v2998_v10  ;;  %v3002_v55 = vpack.c.bf16 %v205_v54, %v204_v7  ;;  %2973 = vmatpush3.bf16.msra.mxu0 %v2970_v42  ;;  %v192_v42 = vld [vmem:[#allocation7 + $0x40] sm:$0xff] }
 0x1f2   :  { %3112 = vpow2.f32 %v1094_v59  ;;  %v1024_v33 = vsub.f32 %v3556_v2, %v901_v44  ;;  %3001 = vmatpush3.bf16.msra.mxu1 %v2998_v10  ;;  %2975 = vmatprep.subr.bf16.mxu0 %v2974_v36 }
 0x1f3   :  { %3114 = vpow2.f32 %v1126_v32  ;;  %v1124_v13 = vmul.f32 1.442695, %v1040_v58  ;;  %3003 = vmatprep.subr.bf16.mxu1 %v3002_v55  ;;  %v193_v32 = vld [vmem:[#allocation7 + $0x48] sm:$0xff]  ;;  %v206_v58 = vld [vmem:[#allocation7 + $0xb0] sm:$0xff] }
 0x1f4   :  { %v3739_v45 = vpop.eup %3104  ;;  %v1092_v46 = vmul.f32 1.442695, %v1024_v33  ;;  %v939_v63 = vpop.xlane.xlu1 %938  ;;  %1244 = vadd.xlane.f32.xlu1 %v3737_v61  ;;  %v2978_v10 = vpack.c.bf16 %v193_v32, %v192_v42 }
 0x1f5   :  { %v1043_v59 = vsub.f32 %v3559_v4, %v939_v63  ;;  %v907_v2 = vpop.xlane.xlu0 %906  ;;  %1218 = vadd.xlane.f32.xlu0 %v3739_v45  ;;  %v3745_v56 = vpop.eup %3106  ;;  %2977 = vmatpush3.bf16.msra.mxu0 %v2974_v36 }
 0x1f6   :  { %3116 = vpow2.f32 %v1092_v46  ;;  %v1027_v53 = vsub.f32 %v3562_v5, %v907_v2  ;;  %3005 = vmatpush3.bf16.msra.mxu1 %v3002_v55  ;;  %2979 = vmatprep.subr.bf16.mxu0 %v2978_v10  ;;  %v208_v2 = vld [vmem:[#allocation7 + $0xc0] sm:$0xff] }
 0x1f7   :  { %3118 = vpow2.f32 %v1124_v13  ;;  %v1130_v4 = vmul.f32 1.442695, %v1043_v59  ;;  %v194_v13 = vld [vmem:[#allocation7 + $0x50] sm:$0xff]  ;;  %v195_v59 = vld [vmem:[#allocation7 + $0x58] sm:$0xff] }
 0x1f8   :  { %v3747_v33 = vpop.eup %3108  ;;  %v1098_v39 = vmul.f32 1.442695, %v1027_v53  ;;  %v937_v12 = vpop.xlane.xlu1 %936  ;;  %1250 = vadd.xlane.f32.xlu1 %v3745_v56 }
 0x1f9   :  { %v1042_v57 = vsub.f32 %v3566_v11, %v937_v12  ;;  %v905_v15 = vpop.xlane.xlu0 %904  ;;  %1216 = vadd.xlane.f32.xlu0 %v3747_v33  ;;  %v3753_v44 = vpop.eup %3110  ;;  %v3006_v11 = vpack.c.bf16 %v207_v49, %v206_v58  ;;  %2981 = vmatpush3.bf16.msra.mxu0 %v2978_v10  ;;  %v209_v12 = vld [vmem:[#allocation7 + $0xc8] sm:$0xff]  ;;  %v196_v58 = vld [vmem:[#allocation7 + $0x60] sm:$0xff]  ;;  %v210_v49 = vld [vmem:[#allocation7 + $0xd0] sm:$0xff] }
 0x1fa   :  { %3120 = vpow2.f32 %v1098_v39  ;;  %v1026_v5 = vsub.f32 %v3568_v14, %v905_v15  ;;  %v2982_v39 = vpack.c.bf16 %v195_v59, %v194_v13  ;;  %v3010_v15 = vpack.c.bf16 %v209_v12, %v208_v2  ;;  %v197_v10 = vld [vmem:[#allocation7 + $0x68] sm:$0xff]  ;;  %v198_v2 = vld [vmem:[#allocation7 + $0x70] sm:$0xff]  ;;  %v212_v12 = vld [vmem:[#allocation7 + $0xe0] sm:$0xff] }
 0x1fb   :  { %3122 = vpow2.f32 %v1130_v4  ;;  %v1128_v63 = vmul.f32 1.442695, %v1042_v57  ;;  %3007 = vmatprep.subr.bf16.mxu1 %v3006_v11 }
 0x1fc   :  { %v3755_v7 = vpop.eup %3112  ;;  %v1096_v54 = vmul.f32 1.442695, %v1026_v5  ;;  %v943_v46 = vpop.xlane.xlu1 %942  ;;  %1248 = vadd.xlane.f32.xlu1 %v3753_v44  ;;  %3009 = vmatpush3.bf16.msra.mxu1 %v3006_v11  ;;  %v211_v11 = vld [vmem:[#allocation7 + $0xd8] sm:$0xff] }
 0x1fd   :  { %v1045_v14 = vsub.f32 %v3571_v16, %v943_v46  ;;  %v911_v36 = vpop.xlane.xlu0 %910  ;;  %1222 = vadd.xlane.f32.xlu0 %v3755_v7  ;;  %v3761_v53 = vpop.eup %3114  ;;  %2983 = vmatprep.subr.bf16.mxu0 %v2982_v39  ;;  %v2986_v46 = vpack.c.bf16 %v197_v10, %v196_v58 }
 0x1fe   :  { %3124 = vpow2.f32 %v1096_v54  ;;  %v1029_v55 = vsub.f32 %v3574_v17, %v911_v36  ;;  %3011 = vmatprep.subr.bf16.mxu1 %v3010_v15  ;;  %2985 = vmatpush3.bf16.msra.mxu0 %v2982_v39  ;;  %v3014_v36 = vpack.c.bf16 %v211_v11, %v210_v49  ;;  %v199_v39 = vld [vmem:[#allocation7 + $0x78] sm:$0xff]  ;;  %v214_v49 = vld [vmem:[#allocation7 + $0xf0] sm:$0xff] }
 0x1ff   :  { %3126 = vpow2.f32 %v1128_v63  ;;  %v1134_v5 = vmul.f32 1.442695, %v1045_v14  ;;  %2987 = vmatprep.subr.bf16.mxu0 %v2986_v46 }
 0x200   :  { %v3763_v4 = vpop.eup %3116  ;;  %v1102_v16 = vmul.f32 1.442695, %v1029_v55  ;;  %v941_v57 = vpop.xlane.xlu1 %940  ;;  %1254 = vadd.xlane.f32.xlu1 %v3761_v53  ;;  %3013 = vmatpush3.bf16.msra.mxu1 %v3010_v15  ;;  %v213_v15 = vld [vmem:[#allocation7 + $0xe8] sm:$0xff] }
 0x201   :  { %v1044_v17 = vsub.f32 %v3578_v18, %v941_v57  ;;  %v909_v42 = vpop.xlane.xlu0 %908  ;;  %1220 = vadd.xlane.f32.xlu0 %v3763_v4  ;;  %v3769_v54 = vpop.eup %3118  ;;  %3015 = vmatprep.subr.bf16.mxu1 %v3014_v36  ;;  %v2990_v57 = vpack.c.bf16 %v199_v39, %v198_v2 }
 0x202   :  { %3128 = vpow2.f32 %v1102_v16  ;;  %v1028_v32 = vsub.f32 %v3580_v19, %v909_v42  ;;  %2989 = vmatpush3.bf16.msra.mxu0 %v2986_v46  ;;  %v3018_v42 = vpack.c.bf16 %v213_v15, %v212_v12  ;;  %v215_v46 = vld [vmem:[#allocation7 + $0xf8] sm:$0xff] }
 0x203   :  { %3130 = vpow2.f32 %v1134_v5  ;;  %v1132_v55 = vmul.f32 1.442695, %v1044_v17  ;;  %2991 = vmatprep.subr.bf16.mxu0 %v2990_v57 }
 0x204   :  { %v3771_v63 = vpop.eup %3120  ;;  %v1100_v18 = vmul.f32 1.442695, %v1028_v32  ;;  %v947_v14 = vpop.xlane.xlu1 %946  ;;  %1252 = vadd.xlane.f32.xlu1 %v3769_v54  ;;  %3017 = vmatpush3.bf16.msra.mxu1 %v3014_v36 }
 0x205   :  { %v1047_v19 = vsub.f32 %v3583_v20, %v947_v14  ;;  %v915_v13 = vpop.xlane.xlu0 %914  ;;  %1226 = vadd.xlane.f32.xlu0 %v3771_v63  ;;  %v3777_v16 = vpop.eup %3122  ;;  %3019 = vmatprep.subr.bf16.mxu1 %v3018_v42 }
 0x206   :  { %3132 = vpow2.f32 %v1100_v18  ;;  %v1031_v59 = vsub.f32 %v3586_v21, %v915_v13  ;;  %2993 = vmatpush3.bf16.msra.mxu0 %v2990_v57  ;;  %v3022_v18 = vpack.c.bf16 %v215_v46, %v214_v49 }
 0x207   :  { %3134 = vpow2.f32 %v1132_v55  ;;  %v1138_v32 = vmul.f32 1.442695, %v1047_v19 }
 0x208   :  { %v3779_v5 = vpop.eup %3124  ;;  %v1106_v20 = vmul.f32 1.442695, %v1031_v59  ;;  %v945_v17 = vpop.xlane.xlu1 %944  ;;  %1258 = vadd.xlane.f32.xlu1 %v3777_v16  ;;  %3021 = vmatpush3.bf16.msra.mxu1 %v3018_v42 }
 0x209   :  { %v1046_v21 = vsub.f32 %v3590_v22, %v945_v17  ;;  %v913_v58 = vpop.xlane.xlu0 %912  ;;  %1224 = vadd.xlane.f32.xlu0 %v3779_v5  ;;  %v3785_v11 = vpop.eup %3126  ;;  %3023 = vmatprep.subr.bf16.mxu1 %v3022_v18 }
 0x20a   :  { %3136 = vpow2.f32 %v1106_v20  ;;  %v1030_v10 = vsub.f32 %v3592_v23, %v913_v58 }
 0x20b   :  { %3138 = vpow2.f32 %v1138_v32  ;;  %v1136_v22 = vmul.f32 1.442695, %v1046_v21 }
 0x20c   :  { %v3787_v14 = vpop.eup %3128  ;;  %v1104_v36 = vmul.f32 1.442695, %v1030_v10  ;;  %v951_v55 = vpop.xlane.xlu1 %950  ;;  %1256 = vadd.xlane.f32.xlu1 %v3785_v11  ;;  %3025 = vmatpush3.bf16.msra.mxu1 %v3022_v18 }
 0x20d   :  { %v1049_v19 = vsub.f32 %v3595_v24, %v951_v55  ;;  %v919_v13 = vpop.xlane.xlu0 %918  ;;  %1230 = vadd.xlane.f32.xlu0 %v3787_v14  ;;  %v3793_v59 = vpop.eup %3130 }
 0x20e   :  { %3140 = vpow2.f32 %v1104_v36  ;;  %v1033_v23 = vsub.f32 %v3598_v25, %v919_v13 }
 0x20f   :  { %3142 = vpow2.f32 %v1136_v22  ;;  %v1142_v57 = vmul.f32 1.442695, %v1049_v19 }
 0x210   :  { %v3795_v2 = vpop.eup %3132  ;;  %v1110_v39 = vmul.f32 1.442695, %v1033_v23  ;;  %v949_v12 = vpop.xlane.xlu1 %948  ;;  %1262 = vadd.xlane.f32.xlu1 %v3793_v59 }
 0x211   :  { %v1048_v24 = vsub.f32 %v3602_v26, %v949_v12  ;;  %v917_v15 = vpop.xlane.xlu0 %916  ;;  %1228 = vadd.xlane.f32.xlu0 %v3795_v2  ;;  %v3801_v25 = vpop.eup %3134 }
 0x212   :  { %3144 = vpow2.f32 %v1110_v39  ;;  %v1032_v20 = vsub.f32 %v3604_v27, %v917_v15 }
 0x213   :  { %3146 = vpow2.f32 %v1142_v57  ;;  %v1140_v21 = vmul.f32 1.442695, %v1048_v24 }
 0x214   :  { %v3803_v17 = vpop.eup %3136  ;;  %v1108_v42 = vmul.f32 1.442695, %v1032_v20  ;;  %v955_v32 = vpop.xlane.xlu1 %954  ;;  %1260 = vadd.xlane.f32.xlu1 %v3801_v25 }
 0x215   :  { %v1051_v58 = vsub.f32 %v3607_v28, %v955_v32  ;;  %v923_v10 = vpop.xlane.xlu0 %922  ;;  %1234 = vadd.xlane.f32.xlu0 %v3803_v17  ;;  %v3809_v49 = vpop.eup %3138 }
 0x216   :  { %3148 = vpow2.f32 %v1108_v42  ;;  %v1035_v26 = vsub.f32 %v3610_v29, %v923_v10 }
 0x217   :  { %3150 = vpow2.f32 %v1140_v21  ;;  %v1146_v36 = vmul.f32 1.442695, %v1051_v58 }
 0x218   :  { %v3811_v27 = vpop.eup %3140  ;;  %v1114_v46 = vmul.f32 1.442695, %v1035_v26  ;;  %v953_v18 = vpop.xlane.xlu1 %952  ;;  %1266 = vadd.xlane.f32.xlu1 %v3809_v49 }
 0x219   :  { %v1050_v55 = vsub.f32 %v3614_v30, %v953_v18  ;;  %v921_v22 = vpop.xlane.xlu0 %920  ;;  %1232 = vadd.xlane.f32.xlu0 %v3811_v27  ;;  %v3817_v19 = vpop.eup %3142 }
 0x21a   :  { %3152 = vpow2.f32 %v1114_v46  ;;  %v1034_v28 = vsub.f32 %v3616_v31, %v921_v22 }
 0x21b   :  { %3154 = vpow2.f32 %v1146_v36  ;;  %v1144_v23 = vmul.f32 1.442695, %v1050_v55 }
 0x21c   :  { %v3819_v29 = vpop.eup %3144  ;;  %v1112_v13 = vmul.f32 1.442695, %v1034_v28  ;;  %1264 = vadd.xlane.f32.xlu1 %v3817_v19 }
 0x21d   :  { %v991_v39 = vpop.xlane.xlu1 %990  ;;  %v959_v12 = vpop.xlane.xlu0 %958  ;;  %1238 = vadd.xlane.f32.xlu0 %v3819_v29 }
 0x21e   :  { %3156 = vpow2.f32 %v1112_v13  ;;  %v1069_v30 = vsub.f32 %v3622_v38, %v991_v39  ;;  %v1053_v57 = vsub.f32 %v3620_v35, %v959_v12  ;;  %v3825_v24 = vpop.eup %3146 }
 0x21f   :  { %3158 = vpow2.f32 %v1144_v23 }
 0x220   :  { %v3827_v31 = vpop.eup %3148  ;;  %v1150_v15 = vmul.f32 1.442695, %v1053_v57  ;;  %1270 = vadd.xlane.f32.xlu1 %v3825_v24  ;;  %v1182_v20 = vmul.f32 1.442695, %v1069_v30  ;;  %v217_v30 = vld [vmem:[#allocation7 + $0x108] sm:$0xff] }
 0x221   :  { %v989_v42 = vpop.xlane.xlu1 %988  ;;  %v957_v32 = vpop.xlane.xlu0 %956  ;;  %1236 = vadd.xlane.f32.xlu0 %v3827_v31 }
 0x222   :  { %v1068_v21 = vsub.f32 %v3628_v48, %v989_v42  ;;  %v1052_v58 = vsub.f32 %v3626_v47, %v957_v32  ;;  %v3833_v38 = vpop.eup %3150  ;;  %3160 = vpow2.f32 %v1150_v15 }
 0x223   :  { %3162 = vpow2.f32 %v1182_v20 }
 0x224   :  { %v3835_v35 = vpop.eup %3152  ;;  %v1148_v10 = vmul.f32 1.442695, %v1052_v58  ;;  %1268 = vadd.xlane.f32.xlu1 %v3833_v38  ;;  %v1180_v26 = vmul.f32 1.442695, %v1068_v21  ;;  %v4113_v58 = vld [vmem:[#allocation12_spill] sm:$0xff] }
 0x225   :  { %v995_v46 = vpop.xlane.xlu1 %994  ;;  %v963_v18 = vpop.xlane.xlu0 %962  ;;  %1242 = vadd.xlane.f32.xlu0 %v3835_v35 }
 0x226   :  { %v1071_v36 = vsub.f32 %v3631_v50, %v995_v46  ;;  %v1055_v48 = vsub.f32 %v3634_v52, %v963_v18  ;;  %v3841_v55 = vpop.eup %3154  ;;  %3164 = vpow2.f32 %v1148_v10  ;;  %v216_v52 = vld [vmem:[#allocation7 + $0x100] sm:$0xff]  ;;  %v4114_v10 = vld [vmem:[#allocation13_spill] sm:$0xff] }
 0x227   :  { %3166 = vpow2.f32 %v1180_v26  ;;  %v3852_v15 = vpack.c.bf16 %v217_v30, %v216_v52  ;;  %v232_v26 = vld [vmem:[#allocation7 + $0x180] sm:$0xff]  ;;  %v233_v46 = vld [vmem:[#allocation7 + $0x188] sm:$0xff]  ;;  %v4116_v52 = vld [vmem:[#allocation14_spill] sm:$0xff] }
 0x228   :  { %v3843_v47 = vpop.eup %3156  ;;  %v1154_v22 = vmul.f32 1.442695, %v1055_v48  ;;  %1274 = vadd.xlane.f32.xlu1 %v3841_v55  ;;  %v1186_v28 = vmul.f32 1.442695, %v1071_v36  ;;  %v3862_v36 = vpack.c.bf16 %v233_v46, %v232_v26  ;;  %v4118_v26 = vld [vmem:[#allocation17_spill] sm:$0xff] }
 0x229   :  { %v993_v13 = vpop.xlane.xlu1 %992  ;;  %v961_v23 = vpop.xlane.xlu0 %960  ;;  %1240 = vadd.xlane.f32.xlu0 %v3843_v47  ;;  %3027 = vmatprep.subr.bf16.mxu0 %v3852_v15 }
 0x22a   :  { %v1070_v39 = vsub.f32 %v3640_v1, %v993_v13  ;;  %v1054_v50 = vsub.f32 %v3638_v0, %v961_v23  ;;  %v3849_v12 = vpop.eup %3158  ;;  %3168 = vpow2.f32 %v1154_v22  ;;  %3059 = vmatprep.subr.bf16.mxu1 %v3862_v36 }
 0x22b   :  { %3170 = vpow2.f32 %v1186_v28 }
 0x22c   :  { %v1152_v57 = vmul.f32 1.442695, %v1054_v50  ;;  %1272 = vadd.xlane.f32.xlu1 %v3849_v12  ;;  %v3854_v20 = vpop.eup %3160  ;;  %v1184_v42 = vmul.f32 1.442695, %v1070_v39  ;;  %v4115_v39 = vld [vmem:[#allocation15_spill] sm:$0xff] }
 0x22d   :  { %v999_v32 = vpop.xlane.xlu1 %998  ;;  %v967_v21 = vpop.xlane.xlu0 %966  ;;  %1278 = vadd.xlane.f32.xlu0 %v3854_v20 }
 0x22e   :  { %v1073_v1 = vsub.f32 %v4113_v58, %v999_v32  ;;  %v1057_v0 = vsub.f32 %v4114_v10, %v967_v21  ;;  %v3860_v18 = vpop.eup %3162  ;;  %3172 = vpow2.f32 %v1152_v57  ;;  %v4117_v10 = vld [vmem:[#allocation16_spill] sm:$0xff] }
 0x22f   :  { %3174 = vpow2.f32 %v1184_v42 }
 0x230   :  { %v1158_v48 = vmul.f32 1.442695, %v1057_v0  ;;  %1310 = vadd.xlane.f32.xlu1 %v3860_v18  ;;  %v3865_v22 = vpop.eup %3164  ;;  %v1190_v28 = vmul.f32 1.442695, %v1073_v1 }
 0x231   :  { %v997_v13 = vpop.xlane.xlu1 %996  ;;  %v965_v23 = vpop.xlane.xlu0 %964  ;;  %1276 = vadd.xlane.f32.xlu0 %v3865_v22 }
 0x232   :  { %v1072_v50 = vsub.f32 %v4115_v39, %v997_v13  ;;  %v1056_v30 = vsub.f32 %v4116_v52, %v965_v23  ;;  %v3871_v57 = vpop.eup %3166  ;;  %3176 = vpow2.f32 %v1158_v48 }
 0x233   :  { %3178 = vpow2.f32 %v1190_v28 }
 0x234   :  { %v1156_v32 = vmul.f32 1.442695, %v1056_v30  ;;  %1308 = vadd.xlane.f32.xlu1 %v3871_v57  ;;  %v3874_v21 = vpop.eup %3168  ;;  %v1188_v42 = vmul.f32 1.442695, %v1072_v50 }
 0x235   :  { %v1003_v58 = vpop.xlane.xlu1 %1002  ;;  %v971_v1 = vpop.xlane.xlu0 %970  ;;  %1282 = vadd.xlane.f32.xlu0 %v3874_v21 }
 0x236   :  { %v1075_v0 = vsub.f32 %v4117_v10, %v1003_v58  ;;  %v1059_v46 = vsub.f32 %v4118_v26, %v971_v1  ;;  %v3879_v13 = vpop.eup %3170  ;;  %3180 = vpow2.f32 %v1156_v32 }
 0x237   :  { %3182 = vpow2.f32 %v1188_v42 }
 0x238   :  { %v1162_v23 = vmul.f32 1.442695, %v1059_v46  ;;  %1314 = vadd.xlane.f32.xlu1 %v3879_v13  ;;  %v3882_v48 = vpop.eup %3172  ;;  %v1194_v39 = vmul.f32 1.442695, %v1075_v0 }
 0x239   :  { %v1001_v28 = vpop.xlane.xlu1 %1000  ;;  %v969_v50 = vpop.xlane.xlu0 %968  ;;  %1280 = vadd.xlane.f32.xlu0 %v3882_v48 }
 0x23a   :  { %v1074_v52 = vsub.f32 %v3664_v37, %v1001_v28  ;;  %v1058_v30 = vsub.f32 %v3662_v6, %v969_v50  ;;  %v3887_v58 = vpop.eup %3174  ;;  %3184 = vpow2.f32 %v1162_v23 }
 0x23b   :  { %3186 = vpow2.f32 %v1194_v39 }
 0x23c   :  { %v1160_v1 = vmul.f32 1.442695, %v1058_v30  ;;  %1312 = vadd.xlane.f32.xlu1 %v3887_v58  ;;  %v3890_v32 = vpop.eup %3176  ;;  %v1192_v10 = vmul.f32 1.442695, %v1074_v52 }
 0x23d   :  { %v1007_v42 = vpop.xlane.xlu1 %1006  ;;  %v975_v0 = vpop.xlane.xlu0 %974  ;;  %1286 = vadd.xlane.f32.xlu0 %v3890_v32 }
 0x23e   :  { %v1077_v26 = vsub.f32 %v3667_v60, %v1007_v42  ;;  %v1061_v37 = vsub.f32 %v3670_v34, %v975_v0  ;;  %v3895_v6 = vpop.eup %3178  ;;  %3188 = vpow2.f32 %v1160_v1 }
 0x23f   :  { %3190 = vpow2.f32 %v1192_v10 }
 0x240   :  { %v1166_v46 = vmul.f32 1.442695, %v1061_v37  ;;  %1318 = vadd.xlane.f32.xlu1 %v3895_v6  ;;  %v3898_v23 = vpop.eup %3180  ;;  %v1198_v28 = vmul.f32 1.442695, %v1077_v26 }
 0x241   :  { %v1005_v39 = vpop.xlane.xlu1 %1004  ;;  %v973_v50 = vpop.xlane.xlu0 %972  ;;  %1284 = vadd.xlane.f32.xlu0 %v3898_v23 }
 0x242   :  { %v1076_v52 = vsub.f32 %v3676_v41, %v1005_v39  ;;  %v1060_v60 = vsub.f32 %v3674_v43, %v973_v50  ;;  %v3903_v34 = vpop.eup %3182  ;;  %3192 = vpow2.f32 %v1166_v46 }
 0x243   :  { %3194 = vpow2.f32 %v1198_v28 }
 0x244   :  { %v1164_v30 = vmul.f32 1.442695, %v1060_v60  ;;  %1316 = vadd.xlane.f32.xlu1 %v3903_v34  ;;  %v3906_v1 = vpop.eup %3184  ;;  %v1196_v42 = vmul.f32 1.442695, %v1076_v52 }
 0x245   :  { %4119 = vst [vmem:[#allocation12_spill] sm:$0xff] %v3906_v1  ;;  %v1011_v10 = vpop.xlane.xlu1 %1010  ;;  %v979_v0 = vpop.xlane.xlu0 %978  ;;  %1290 = vadd.xlane.f32.xlu0 %v3906_v1  ;;  %v4129_v1 = vld [vmem:[#allocation20_spill] sm:$0xff] }
 0x246   :  { %v1079_v26 = vsub.f32 %v3679_v62, %v1011_v10  ;;  %v1063_v41 = vsub.f32 %v3682_v3, %v979_v0  ;;  %v3911_v43 = vpop.eup %3186  ;;  %3196 = vpow2.f32 %v1164_v30 }
 0x247   :  { %4120 = vst [vmem:[#allocation13_spill] sm:$0xff] %v3911_v43  ;;  %3198 = vpow2.f32 %v1196_v42 }
 0x248   :  { %v1170_v37 = vmul.f32 1.442695, %v1063_v41  ;;  %1322 = vadd.xlane.f32.xlu1 %v3911_v43  ;;  %v3914_v46 = vpop.eup %3188  ;;  %v1202_v39 = vmul.f32 1.442695, %v1079_v26  ;;  %v4124_v26 = vld [vmem:[#allocation18_spill] sm:$0xff]  ;;  %v4125_v43 = vld [vmem:[#allocation19_spill] sm:$0xff] }
 0x249   :  { %4121 = vst [vmem:[#allocation15_spill] sm:$0xff] %v3914_v46  ;;  %v1009_v28 = vpop.xlane.xlu1 %1008  ;;  %v977_v50 = vpop.xlane.xlu0 %976  ;;  %1288 = vadd.xlane.f32.xlu0 %v3914_v46 }
 0x24a   :  { %v1078_v52 = vsub.f32 %v3688_v9, %v1009_v28  ;;  %v1062_v62 = vsub.f32 %v3686_v8, %v977_v50  ;;  %v3919_v3 = vpop.eup %3190  ;;  %3200 = vpow2.f32 %v1170_v37 }
 0x24b   :  { %4122 = vst [vmem:[#allocation14_spill] sm:$0xff] %v3919_v3  ;;  %3202 = vpow2.f32 %v1202_v39 }
 0x24c   :  { %v1168_v60 = vmul.f32 1.442695, %v1062_v62  ;;  %1320 = vadd.xlane.f32.xlu1 %v3919_v3  ;;  %v3922_v30 = vpop.eup %3192  ;;  %v1200_v10 = vmul.f32 1.442695, %v1078_v52  ;;  %v4128_v62 = vld [vmem:[#allocation21_spill] sm:$0xff] }
 0x24d   :  { %4123 = vst [vmem:[#allocation16_spill] sm:$0xff] %v3922_v30  ;;  %v1015_v42 = vpop.xlane.xlu1 %1014  ;;  %v983_v0 = vpop.xlane.xlu0 %982  ;;  %1294 = vadd.xlane.f32.xlu0 %v3922_v30 }
 0x24e   :  { %v1081_v41 = vsub.f32 %v4124_v26, %v1015_v42  ;;  %v1065_v9 = vsub.f32 %v4125_v43, %v983_v0  ;;  %v3927_v8 = vpop.eup %3194  ;;  %3204 = vpow2.f32 %v1168_v60 }
 0x24f   :  { %4126 = vst [vmem:[#allocation17_spill] sm:$0xff] %v3927_v8  ;;  %3206 = vpow2.f32 %v1200_v10 }
 0x250   :  { %v1174_v28 = vmul.f32 1.442695, %v1065_v9  ;;  %1326 = vadd.xlane.f32.xlu1 %v3927_v8  ;;  %v3930_v37 = vpop.eup %3196  ;;  %v1206_v50 = vmul.f32 1.442695, %v1081_v41 }
 0x251   :  { %4127 = vst [vmem:[#allocation18_spill] sm:$0xff] %v3930_v37  ;;  %v1013_v39 = vpop.xlane.xlu1 %1012  ;;  %v981_v52 = vpop.xlane.xlu0 %980  ;;  %1292 = vadd.xlane.f32.xlu0 %v3930_v37 }
 0x252   :  { %v1080_v3 = vsub.f32 %v4128_v62, %v1013_v39  ;;  %v1064_v42 = vsub.f32 %v4129_v1, %v981_v52  ;;  %v3935_v43 = vpop.eup %3198  ;;  %3208 = vpow2.f32 %v1174_v28  ;;  %v4134_v52 = vld [vmem:[#allocation22_spill] sm:$0xff] }
 0x253   :  { %4130 = vst [vmem:[#allocation19_spill] sm:$0xff] %v3935_v43  ;;  %3210 = vpow2.f32 %v1206_v50 }
 0x254   :  { %v1172_v0 = vmul.f32 1.442695, %v1064_v42  ;;  %1324 = vadd.xlane.f32.xlu1 %v3935_v43  ;;  %v3938_v60 = vpop.eup %3200  ;;  %v1204_v26 = vmul.f32 1.442695, %v1080_v3  ;;  %v4135_v42 = vld [vmem:[#allocation25_spill] sm:$0xff]  ;;  %v4136_v3 = vld [vmem:[#allocation24_spill] sm:$0xff] }
 0x255   :  { %4131 = vst [vmem:[#allocation21_spill] sm:$0xff] %v3938_v60  ;;  %v1019_v10 = vpop.xlane.xlu1 %1018  ;;  %v987_v41 = vpop.xlane.xlu0 %986  ;;  %1298 = vadd.xlane.f32.xlu0 %v3938_v60  ;;  %v4138_v60 = vld [vmem:[#allocation23_spill] sm:$0xff] }
 0x256   :  { %v3941_v9 = vpop.eup %3202  ;;  %3212 = vpow2.f32 %v1172_v0  ;;  %v1083_v62 = vsub.f32 %v4134_v52, %v1019_v10  ;;  %v1067_v30 = vsub.f32 %v4138_v60, %v987_v41 }
 0x257   :  { %4132 = vst [vmem:[#allocation20_spill] sm:$0xff] %v3941_v9  ;;  %3214 = vpow2.f32 %v1204_v26 }
 0x258   :  { %1330 = vadd.xlane.f32.xlu1 %v3941_v9  ;;  %v3944_v1 = vpop.eup %3204  ;;  %v1210_v26 = vmul.f32 1.442695, %v1083_v62 }
 0x259   :  { %4133 = vst [vmem:[#allocation27_spill] sm:$0xff] %v3944_v1  ;;  %v1017_v28 = vpop.xlane.xlu1 %1016  ;;  %v985_v39 = vpop.xlane.xlu0 %984  ;;  %1296 = vadd.xlane.f32.xlu0 %v3944_v1 }
 0x25a   :  { %v1082_v8 = vsub.f32 %v4135_v42, %v1017_v28  ;;  %v1066_v50 = vsub.f32 %v4136_v3, %v985_v39  ;;  %v3950_v43 = vpop.eup %3206  ;;  %v1178_v28 = vmul.f32 1.442695, %v1067_v30 }
 0x25b   :  { %4137 = vst [vmem:[#allocation22_spill] sm:$0xff] %v3950_v43 }
 0x25c   :  { %v1208_v0 = vmul.f32 1.442695, %v1082_v8  ;;  %v1176_v37 = vmul.f32 1.442695, %v1066_v50  ;;  %1328 = vadd.xlane.f32.xlu1 %v3950_v43  ;;  %v3954_v9 = vpop.eup %3208 }
 0x25d   :  { %4139 = vst [vmem:[#allocation25_spill] sm:$0xff] %v3954_v9  ;;  %1302 = vadd.xlane.f32.xlu0 %v3954_v9  ;;  %v3957_v10 = vpop.eup %3210  ;;  %v235_v9 = vld [vmem:[#allocation7 + $0x198] sm:$0xff] }
 0x25e   :  { %3216 = vpow2.f32 %v1208_v0  ;;  %4140 = vst [vmem:[#allocation24_spill] sm:$0xff] %v3957_v10 }
 0x25f   :  { %3218 = vpow2.f32 %v1176_v37 }
 0x260   :  { %1334 = vadd.xlane.f32.xlu1 %v3957_v10  ;;  %v3960_v39 = vpop.eup %3212  ;;  %3220 = vpow2.f32 %v1210_v26 }
 0x261   :  { %4141 = vst [vmem:[#allocation23_spill] sm:$0xff] %v3960_v39  ;;  %1300 = vadd.xlane.f32.xlu0 %v3960_v39  ;;  %v3963_v8 = vpop.eup %3214  ;;  %3222 = vpow2.f32 %v1178_v28 }
 0x262   :  { %4142 = vst [vmem:[#allocation28_spill] sm:$0xff] %v3963_v8 }
 0x264   :  { %1332 = vadd.xlane.f32.xlu1 %v3963_v8 }
 0x268   :  { %v3966_v60 = vpop.eup %3216 }
 0x269   :  { %4143 = vst [vmem:[#allocation29_spill] sm:$0xff] %v3966_v60  ;;  %v3968_v41 = vpop.eup %3218  ;;  %1336 = vadd.xlane.f32.xlu1 %v3966_v60  ;;  %v219_v60 = vld [vmem:[#allocation7 + $0x118] sm:$0xff] }
 0x26a   :  { %4144 = vst [vmem:[#allocation30_spill] sm:$0xff] %v3968_v41  ;;  %1304 = vadd.xlane.f32.xlu0 %v3968_v41  ;;  %v3972_v30 = vpop.eup %3220  ;;  %v218_v41 = vld [vmem:[#allocation7 + $0x110] sm:$0xff] }
 0x26b   :  { %4145 = vst [vmem:[#allocation31_spill] sm:$0xff] %v3972_v30  ;;  %v3974_v37 = vpop.eup %3222 }
 0x26c   :  { %4146 = vst [vmem:[#allocation32_spill] sm:$0xff] %v3974_v37 }
 0x26d   :  { %1338 = vadd.xlane.f32.xlu1 %v3972_v30 }
 0x26e   :  { %1306 = vadd.xlane.f32.xlu0 %v3974_v37 }
 0x279   :  { %v1215_v52 = vpop.xlane.xlu0 %1214 }
 0x27a   :  { %3224 = vrcp.f32 %v1215_v52 }
 0x27d   :  { %v1247_v62 = vpop.xlane.xlu1 %1246  ;;  %v1213_v42 = vpop.xlane.xlu0 %1212 }
 0x27e   :  { %3226 = vrcp.f32 %v1213_v42  ;;  %v3030_v42 = vpack.c.bf16 %v219_v60, %v218_v41  ;;  %v237_v60 = vld [vmem:[#allocation7 + $0x1a8] sm:$0xff]  ;;  %v222_v41 = vld [vmem:[#allocation7 + $0x130] sm:$0xff] }
 0x27f   :  { %3228 = vrcp.f32 %v1247_v62 }
 0x281   :  { %v1245_v3 = vpop.xlane.xlu1 %1244 }
 0x282   :  { %3230 = vrcp.f32 %v1245_v3  ;;  %v1219_v50 = vpop.xlane.xlu0 %1218  ;;  %v234_v3 = vld [vmem:[#allocation7 + $0x190] sm:$0xff] }
 0x283   :  { %3232 = vrcp.f32 %v1219_v50  ;;  %v220_v50 = vld [vmem:[#allocation7 + $0x120] sm:$0xff] }
 0x284   :  { %v3225_v28 = vpop.eup %3224 }
 0x285   :  { %v1251_v0 = vpop.xlane.xlu1 %1250  ;;  %v1405_v62 = vmul.f32 %v3225_v28, %v3724_v40  ;;  %v223_v28 = vld [vmem:[#allocation7 + $0x138] sm:$0xff] }
 0x286   :  { %v1217_v26 = vpop.xlane.xlu0 %1216 }
 0x287   :  { %3234 = vrcp.f32 %v1217_v26  ;;  %v221_v26 = vld [vmem:[#allocation7 + $0x128] sm:$0xff] }
 0x288   :  { %v3227_v10 = vpop.eup %3226  ;;  %3236 = vrcp.f32 %v1251_v0  ;;  %v4147_v0 = vld [vmem:[#allocation26_spill] sm:$0xff]  ;;  %v3034_v40 = vpack.c.bf16 %v221_v26, %v220_v50  ;;  %v225_v26 = vld [vmem:[#allocation7 + $0x148] sm:$0xff] }
 0x289   :  { %v1249_v30 = vpop.xlane.xlu1 %1248  ;;  %v1404_v8 = vmul.f32 %v3227_v10, %v3728_v51  ;;  %v3229_v52 = vpop.eup %3228  ;;  %v3062_v51 = vpack.c.bf16 %v235_v9, %v234_v3  ;;  %v236_v10 = vld [vmem:[#allocation7 + $0x1a0] sm:$0xff]  ;;  %v239_v3 = vld [vmem:[#allocation7 + $0x1b8] sm:$0xff] }
 0x28a   :  { %3238 = vrcp.f32 %v1249_v30  ;;  %v1223_v37 = vpop.xlane.xlu0 %1222  ;;  %v1421_v46 = vmul.f32 %v3229_v52, %v4147_v0  ;;  %v3066_v9 = vpack.c.bf16 %v237_v60, %v236_v10  ;;  %v3038_v52 = vpack.c.bf16 %v223_v28, %v222_v41  ;;  %v240_v10 = vld [vmem:[#allocation7 + $0x1c0] sm:$0xff]  ;;  %v241_v60 = vld [vmem:[#allocation7 + $0x1c8] sm:$0xff]  ;;  %v226_v41 = vld [vmem:[#allocation7 + $0x150] sm:$0xff] }
 0x28b   :  { %2642 = vmatprep.mubr.f32.mxu0 %v1404_v8  ;;  %3240 = vrcp.f32 %v1223_v37  ;;  %v227_v28 = vld [vmem:[#allocation7 + $0x158] sm:$0xff] }
 0x28c   :  { %v3231_v39 = vpop.eup %3230  ;;  %2643 = vmatmul.mubr.f32.vlgmr.msra.gmra.mrb[32].mxu0 %v1405_v62 }
 0x28d   :  { %v1255_v43 = vpop.xlane.xlu1 %1254  ;;  %v1420_v1 = vmul.f32 %v3231_v39, %v3737_v61  ;;  %3029 = vmatpush3.bf16.msra.mxu0 %v3852_v15  ;;  %v3233_v8 = vpop.eup %3232 }
 0x28e   :  { %v1221_v30 = vpop.xlane.xlu0 %1220  ;;  %3031 = vmatprep.subr.bf16.mxu0 %v3030_v42  ;;  %v1407_v37 = vmul.f32 %v3233_v8, %v3739_v45 }
 0x28f   :  { %3242 = vrcp.f32 %v1221_v30  ;;  %2698 = vmatprep.mubr.f32.mxu1 %v1420_v1 }
 0x290   :  { %2699 = vmatmul.mubr.f32.vlgmr.msra.gmra.mrb[32].mxu1 %v1421_v46  ;;  %3244 = vrcp.f32 %v1255_v43  ;;  %v238_v46 = vld [vmem:[#allocation7 + $0x1b0] sm:$0xff]  ;;  %v224_v43 = vld [vmem:[#allocation7 + $0x140] sm:$0xff] }
 0x291   :  { %v3235_v62 = vpop.eup %3234  ;;  %v1253_v61 = vpop.xlane.xlu1 %1252  ;;  %3061 = vmatpush3.bf16.msra.mxu1 %v3862_v36  ;;  %3033 = vmatpush3.bf16.msra.mxu0 %v3030_v42  ;;  %v3070_v45 = vpack.c.bf16 %v239_v3, %v238_v46  ;;  %v3042_v30 = vpack.c.bf16 %v225_v26, %v224_v43  ;;  %v228_v3 = vld [vmem:[#allocation7 + $0x160] sm:$0xff] }
 0x292   :  { %3246 = vrcp.f32 %v1253_v61  ;;  %v1227_v39 = vpop.xlane.xlu0 %1226  ;;  %v1406_v15 = vmul.f32 %v3235_v62, %v3747_v33  ;;  %3063 = vmatprep.subr.bf16.mxu1 %v3062_v51  ;;  %v3237_v1 = vpop.eup %3236  ;;  %3035 = vmatprep.subr.bf16.mxu0 %v3034_v40 }
 0x293   :  { %3248 = vrcp.f32 %v1227_v39  ;;  %v1423_v42 = vmul.f32 %v3237_v1, %v3745_v56  ;;  %v242_v1 = vld [vmem:[#allocation7 + $0x1d0] sm:$0xff] }
 0x294   :  { %v3239_v50 = vpop.eup %3238  ;;  %2645 = vmatprep.mubr.f32.mxu0 %v1406_v15  ;;  %v3046_v15 = vpack.c.bf16 %v227_v28, %v226_v41 }
 0x295   :  { %v1259_v0 = vpop.xlane.xlu1 %1258  ;;  %2646 = vmatmul.mubr.f32.gmra.mrb[34].mxu0 %v1407_v37  ;;  %v1422_v36 = vmul.f32 %v3239_v50, %v3753_v44  ;;  %3065 = vmatpush3.bf16.msra.mxu1 %v3062_v51  ;;  %v3241_v8 = vpop.eup %3240  ;;  %v243_v37 = vld [vmem:[#allocation7 + $0x1d8] sm:$0xff]  ;;  %v229_v50 = vld [vmem:[#allocation7 + $0x168] sm:$0xff] }
 0x296   :  { %v1225_v33 = vpop.xlane.xlu0 %1224  ;;  %3037 = vmatpush3.bf16.msra.mxu0 %v3034_v40  ;;  %3067 = vmatprep.subr.bf16.mxu1 %v3066_v9  ;;  %v3074_v40 = vpack.c.bf16 %v241_v60, %v240_v10  ;;  %v1409_v39 = vmul.f32 %v3241_v8, %v3755_v7  ;;  %v3078_v7 = vpack.c.bf16 %v243_v37, %v242_v1  ;;  %v231_v10 = vld [vmem:[#allocation7 + $0x178] sm:$0xff] }
 0x297   :  { %3250 = vrcp.f32 %v1225_v33  ;;  %2701 = vmatprep.mubr.f32.mxu1 %v1422_v36  ;;  %3039 = vmatprep.subr.bf16.mxu0 %v3038_v52  ;;  %v3050_v26 = vpack.c.bf16 %v229_v50, %v228_v3  ;;  %v245_v36 = vld [vmem:[#allocation7 + $0x1e8] sm:$0xff] }
 0x298   :  { %2702 = vmatmul.mubr.f32.gmra.mrb[34].mxu1 %v1423_v42  ;;  %3252 = vrcp.f32 %v1259_v0  ;;  %v244_v0 = vld [vmem:[#allocation7 + $0x1e0] sm:$0xff]  ;;  %v230_v42 = vld [vmem:[#allocation7 + $0x170] sm:$0xff] }
 0x299   :  { %v3243_v62 = vpop.eup %3242  ;;  %v1257_v44 = vpop.xlane.xlu1 %1256  ;;  %3069 = vmatpush3.bf16.msra.mxu1 %v3066_v9  ;;  %v3054_v28 = vpack.c.bf16 %v231_v10, %v230_v42 }
 0x29a   :  { %3254 = vrcp.f32 %v1257_v44  ;;  %v1231_v51 = vpop.xlane.xlu0 %1230  ;;  %v1408_v56 = vmul.f32 %v3243_v62, %v3763_v4  ;;  %3041 = vmatpush3.bf16.msra.mxu0 %v3038_v52  ;;  %3071 = vmatprep.subr.bf16.mxu1 %v3070_v45  ;;  %v3245_v61 = vpop.eup %3244  ;;  %v246_v62 = vld [vmem:[#allocation7 + $0x1f0] sm:$0xff]  ;;  %v247_v44 = vld [vmem:[#allocation7 + $0x1f8] sm:$0xff] }
 0x29b   :  { %3043 = vmatprep.subr.bf16.mxu0 %v3042_v30  ;;  %3256 = vrcp.f32 %v1231_v51  ;;  %v1425_v52 = vmul.f32 %v3245_v61, %v3761_v53 }
 0x29c   :  { %v3247_v46 = vpop.eup %3246  ;;  %2648 = vmatprep.mubr.f32.mxu0 %v1408_v56 }
 0x29d   :  { %v1263_v43 = vpop.xlane.xlu1 %1262  ;;  %2649 = vmatmul.mubr.f32.gmra.mrb[36].mxu0 %v1409_v39  ;;  %v1424_v9 = vmul.f32 %v3247_v46, %v3769_v54  ;;  %3073 = vmatpush3.bf16.msra.mxu1 %v3070_v45  ;;  %v3249_v33 = vpop.eup %3248  ;;  %v3086_v39 = vpack.c.bf16 %v247_v44, %v246_v62 }
 0x29e   :  { %v1229_v4 = vpop.xlane.xlu0 %1228  ;;  %3045 = vmatpush3.bf16.msra.mxu0 %v3042_v30  ;;  %3075 = vmatprep.subr.bf16.mxu1 %v3074_v40  ;;  %v3082_v30 = vpack.c.bf16 %v245_v36, %v244_v0  ;;  %v1411_v41 = vmul.f32 %v3249_v33, %v3771_v63 }
 0x29f   :  { %3258 = vrcp.f32 %v1229_v4  ;;  %2704 = vmatprep.mubr.f32.mxu1 %v1424_v9  ;;  %3047 = vmatprep.subr.bf16.mxu0 %v3046_v15 }
 0x2a0   :  { %2705 = vmatmul.mubr.f32.gmra.mrb[36].mxu1 %v1425_v52  ;;  %3260 = vrcp.f32 %v1263_v43 }
 0x2a1   :  { %v3251_v60 = vpop.eup %3250  ;;  %v1261_v54 = vpop.xlane.xlu1 %1260  ;;  %3077 = vmatpush3.bf16.msra.mxu1 %v3074_v40 }
 0x2a2   :  { %3262 = vrcp.f32 %v1261_v54  ;;  %v1235_v45 = vpop.xlane.xlu0 %1234  ;;  %v1410_v53 = vmul.f32 %v3251_v60, %v3779_v5  ;;  %3049 = vmatpush3.bf16.msra.mxu0 %v3046_v15  ;;  %3079 = vmatprep.subr.bf16.mxu1 %v3078_v7  ;;  %v3253_v8 = vpop.eup %3252 }
 0x2a3   :  { %3051 = vmatprep.subr.bf16.mxu0 %v3050_v26  ;;  %3264 = vrcp.f32 %v1235_v45  ;;  %v1427_v5 = vmul.f32 %v3253_v8, %v3777_v16 }
 0x2a4   :  { %v3255_v51 = vpop.eup %3254  ;;  %2651 = vmatprep.mubr.f32.mxu0 %v1410_v53 }
 0x2a5   :  { %v1267_v56 = vpop.xlane.xlu1 %1266  ;;  %2652 = vmatmul.mubr.f32.gmra.mrb[38].mxu0 %v1411_v41  ;;  %v1426_v40 = vmul.f32 %v3255_v51, %v3785_v11  ;;  %3081 = vmatpush3.bf16.msra.mxu1 %v3078_v7  ;;  %v3257_v63 = vpop.eup %3256 }
 0x2a6   :  { %v1233_v61 = vpop.xlane.xlu0 %1232  ;;  %3053 = vmatpush3.bf16.msra.mxu0 %v3050_v26  ;;  %3083 = vmatprep.subr.bf16.mxu1 %v3082_v30  ;;  %v1413_v16 = vmul.f32 %v3257_v63, %v3787_v14 }
 0x2a7   :  { %3266 = vrcp.f32 %v1233_v61  ;;  %2707 = vmatprep.mubr.f32.mxu1 %v1426_v40  ;;  %3055 = vmatprep.subr.bf16.mxu0 %v3054_v28 }
 0x2a8   :  { %2708 = vmatmul.mubr.f32.gmra.mrb[38].mxu1 %v1427_v5  ;;  %3268 = vrcp.f32 %v1267_v56 }
 0x2a9   :  { %v3259_v15 = vpop.eup %3258  ;;  %v1265_v1 = vpop.xlane.xlu1 %1264  ;;  %3085 = vmatpush3.bf16.msra.mxu1 %v3082_v30 }
 0x2aa   :  { %3270 = vrcp.f32 %v1265_v1  ;;  %v1239_v37 = vpop.xlane.xlu0 %1238  ;;  %v1412_v11 = vmul.f32 %v3259_v15, %v3795_v2  ;;  %3057 = vmatpush3.bf16.msra.mxu0 %v3054_v28  ;;  %3087 = vmatprep.subr.bf16.mxu1 %v3086_v39  ;;  %v3261_v46 = vpop.eup %3260 }
 0x2ab   :  { %3272 = vrcp.f32 %v1239_v37  ;;  %v1429_v4 = vmul.f32 %v3261_v46, %v3793_v59 }
 0x2ac   :  { %v3263_v3 = vpop.eup %3262  ;;  %2654 = vmatprep.mubr.f32.mxu0 %v1412_v11 }
 0x2ad   :  { %v1271_v50 = vpop.xlane.xlu1 %1270  ;;  %2655 = vmatmul.mubr.f32.gmra.mrb[40].mxu0 %v1413_v16  ;;  %v1428_v43 = vmul.f32 %v3263_v3, %v3801_v25  ;;  %3089 = vmatpush3.bf16.msra.mxu1 %v3086_v39  ;;  %v3265_v52 = vpop.eup %3264 }
 0x2ae   :  { %v1237_v9 = vpop.xlane.xlu0 %1236  ;;  %v1415_v36 = vmul.f32 %v3265_v52, %v3803_v17 }
 0x2af   :  { %3274 = vrcp.f32 %v1237_v9  ;;  %2710 = vmatprep.mubr.f32.mxu1 %v1428_v43 }
 0x2b0   :  { %2711 = vmatmul.mubr.f32.gmra.mrb[40].mxu1 %v1429_v4  ;;  %3276 = vrcp.f32 %v1271_v50 }
 0x2b1   :  { %v3267_v2 = vpop.eup %3266  ;;  %v1269_v7 = vpop.xlane.xlu1 %1268 }
 0x2b2   :  { %3278 = vrcp.f32 %v1269_v7  ;;  %v1243_v14 = vpop.xlane.xlu0 %1242  ;;  %v1414_v26 = vmul.f32 %v3267_v2, %v3811_v27  ;;  %v3269_v0 = vpop.eup %3268 }
 0x2b3   :  { %3280 = vrcp.f32 %v1243_v14  ;;  %v1431_v10 = vmul.f32 %v3269_v0, %v3809_v49 }
 0x2b4   :  { %v3271_v25 = vpop.eup %3270  ;;  %2657 = vmatprep.mubr.f32.mxu0 %v1414_v26 }
 0x2b5   :  { %v1275_v33 = vpop.xlane.xlu1 %1274  ;;  %2658 = vmatmul.mubr.f32.gmra.mrb[42].mxu0 %v1415_v36  ;;  %v1430_v59 = vmul.f32 %v3271_v25, %v3817_v19  ;;  %v3273_v60 = vpop.eup %3272 }
 0x2b6   :  { %v1241_v42 = vpop.xlane.xlu0 %1240  ;;  %v1417_v30 = vmul.f32 %v3273_v60, %v3819_v29 }
 0x2b7   :  { %3282 = vrcp.f32 %v1241_v42  ;;  %2713 = vmatprep.mubr.f32.mxu1 %v1430_v59 }
 0x2b8   :  { %2714 = vmatmul.mubr.f32.gmra.mrb[42].mxu1 %v1431_v10  ;;  %3284 = vrcp.f32 %v1275_v33 }
 0x2b9   :  { %v3275_v54 = vpop.eup %3274  ;;  %v1273_v27 = vpop.xlane.xlu1 %1272 }
 0x2ba   :  { %3286 = vrcp.f32 %v1273_v27  ;;  %v1416_v17 = vmul.f32 %v3275_v54, %v3827_v31  ;;  %v3277_v45 = vpop.eup %3276  ;;  %v1279_v53 = vpop.xlane.xlu0 %1278 }
 0x2bb   :  { %v1433_v41 = vmul.f32 %v3277_v45, %v3825_v24  ;;  %3288 = vrcp.f32 %v1279_v53 }
 0x2bc   :  { %v3279_v8 = vpop.eup %3278  ;;  %2660 = vmatprep.mubr.f32.mxu0 %v1416_v17 }
 0x2bd   :  { %v1311_v19 = vpop.xlane.xlu1 %1310  ;;  %2661 = vmatmul.mubr.f32.gmra.mrb[44].mxu0 %v1417_v30  ;;  %v1432_v49 = vmul.f32 %v3279_v8, %v3833_v38  ;;  %v3281_v62 = vpop.eup %3280  ;;  %v4149_v30 = vld [vmem:[#allocation12_spill] sm:$0xff] }
 0x2be   :  { %v1277_v28 = vpop.xlane.xlu0 %1276  ;;  %v1419_v40 = vmul.f32 %v3281_v62, %v3835_v35 }
 0x2bf   :  { %2716 = vmatprep.mubr.f32.mxu1 %v1432_v49  ;;  %3290 = vrcp.f32 %v1277_v28  ;;  %v4151_v49 = vld [vmem:[#allocation13_spill] sm:$0xff] }
 0x2c0   :  { %2717 = vmatmul.mubr.f32.gmra.mrb[44].mxu1 %v1433_v41  ;;  %3292 = vrcp.f32 %v1311_v19 }
 0x2c1   :  { %v3283_v44 = vpop.eup %3282  ;;  %v1309_v31 = vpop.xlane.xlu1 %1308 }
 0x2c2   :  { %3294 = vrcp.f32 %v1309_v31  ;;  %v1418_v29 = vmul.f32 %v3283_v44, %v3843_v47  ;;  %v3285_v51 = vpop.eup %3284  ;;  %v1283_v56 = vpop.xlane.xlu0 %1282 }
 0x2c3   :  { %v1435_v5 = vmul.f32 %v3285_v51, %v3841_v55  ;;  %3296 = vrcp.f32 %v1283_v56  ;;  %v4152_v56 = vld [vmem:[#allocation18_spill] sm:$0xff] }
 0x2c4   :  { %v3287_v61 = vpop.eup %3286  ;;  %2663 = vmatprep.mubr.f32.mxu0 %v1418_v29 }
 0x2c5   :  { %v1315_v38 = vpop.xlane.xlu1 %1314  ;;  %2664 = vmatmul.mubr.f32.gmra.mrb[46].mxu0 %v1419_v40  ;;  %v1434_v24 = vmul.f32 %v3287_v61, %v3849_v12  ;;  %v3289_v63 = vpop.eup %3288 }
 0x2c6   :  { %v1281_v39 = vpop.xlane.xlu0 %1280  ;;  %v1437_v46 = vmul.f32 %v3289_v63, %v3854_v20 }
 0x2c7   :  { %2719 = vmatprep.mubr.f32.mxu1 %v1434_v24  ;;  %3298 = vrcp.f32 %v1281_v39  ;;  %v4154_v39 = vld [vmem:[#allocation19_spill] sm:$0xff] }
 0x2c8   :  { %2720 = vmatmul.mubr.f32.gmra.mrb[46].mxu1 %v1435_v5  ;;  %3300 = vrcp.f32 %v1315_v38  ;;  %v4153_v38 = vld [vmem:[#allocation16_spill] sm:$0xff] }
 0x2c9   :  { %v1313_v47 = vpop.xlane.xlu1 %1312  ;;  %v3291_v15 = vpop.eup %3290 }
 0x2ca   :  { %3302 = vrcp.f32 %v1313_v47  ;;  %v3293_v1 = vpop.eup %3292  ;;  %v1287_v35 = vpop.xlane.xlu0 %1286  ;;  %v1436_v37 = vmul.f32 %v3291_v15, %v3865_v22  ;;  %v4155_v47 = vld [vmem:[#allocation17_spill] sm:$0xff] }
 0x2cb   :  { %v1453_v16 = vmul.f32 %v3293_v1, %v3860_v18  ;;  %3304 = vrcp.f32 %v1287_v35 }
 0x2cc   :  { %v3295_v11 = vpop.eup %3294  ;;  %2754 = vmatprep.mubr.f32.mxu0 %v1436_v37 }
 0x2cd   :  { %v1319_v12 = vpop.xlane.xlu1 %1318  ;;  %v1452_v55 = vmul.f32 %v3295_v11, %v3871_v57  ;;  %2755 = vmatmul.mubr.f32.vlgmr.msra.gmra.mrb[48].mxu0 %v1437_v46  ;;  %v3297_v50 = vpop.eup %3296 }
 0x2ce   :  { %v1285_v3 = vpop.xlane.xlu0 %1284  ;;  %v1439_v57 = vmul.f32 %v3297_v50, %v3874_v21 }
 0x2cf   :  { %2810 = vmatprep.mubr.f32.mxu1 %v1452_v55  ;;  %3306 = vrcp.f32 %v1285_v3  ;;  %v4157_v3 = vld [vmem:[#allocation21_spill] sm:$0xff] }
 0x2d0   :  { %2811 = vmatmul.mubr.f32.vlgmr.msra.gmra.mrb[48].mxu1 %v1453_v16  ;;  %3308 = vrcp.f32 %v1319_v12  ;;  %v4156_v12 = vld [vmem:[#allocation27_spill] sm:$0xff] }
 0x2d1   :  { %v1317_v43 = vpop.xlane.xlu1 %1316  ;;  %v3299_v9 = vpop.eup %3298 }
 0x2d2   :  { %3310 = vrcp.f32 %v1317_v43  ;;  %v3301_v22 = vpop.eup %3300  ;;  %v1291_v4 = vpop.xlane.xlu0 %1290  ;;  %v1438_v20 = vmul.f32 %v3299_v9, %v3882_v48  ;;  %v4158_v43 = vld [vmem:[#allocation22_spill] sm:$0xff] }
 0x2d3   :  { %v1455_v7 = vmul.f32 %v3301_v22, %v3879_v13  ;;  %3312 = vrcp.f32 %v1291_v4  ;;  %v4159_v4 = vld [vmem:[#allocation20_spill] sm:$0xff] }
 0x2d4   :  { %v3303_v52 = vpop.eup %3302  ;;  %2757 = vmatprep.mubr.f32.mxu0 %v1438_v20 }
 0x2d5   :  { %v1323_v18 = vpop.xlane.xlu1 %1322  ;;  %v1454_v2 = vmul.f32 %v3303_v52, %v3887_v58  ;;  %2758 = vmatmul.mubr.f32.gmra.mrb[50].mxu0 %v1439_v57  ;;  %v3305_v26 = vpop.eup %3304 }
 0x2d6   :  { %v1289_v14 = vpop.xlane.xlu0 %1288  ;;  %v1441_v58 = vmul.f32 %v3305_v26, %v3890_v32  ;;  %v4148_v32 = vld [vmem:[#allocation15_spill] sm:$0xff] }
 0x2d7   :  { %2813 = vmatprep.mubr.f32.mxu1 %v1454_v2  ;;  %3314 = vrcp.f32 %v1289_v14  ;;  %v4160_v26 = vld [vmem:[#allocation23_spill] sm:$0xff] }
 0x2d8   :  { %2814 = vmatmul.mubr.f32.gmra.mrb[50].mxu1 %v1455_v7  ;;  %3316 = vrcp.f32 %v1323_v18 }
 0x2d9   :  { %v1321_v0 = vpop.xlane.xlu1 %1320  ;;  %v3307_v36 = vpop.eup %3306 }
 0x2da   :  { %3318 = vrcp.f32 %v1321_v0  ;;  %v3309_v48 = vpop.eup %3308  ;;  %v1295_v25 = vpop.xlane.xlu0 %1294  ;;  %v1440_v21 = vmul.f32 %v3307_v36, %v3898_v23 }
 0x2db   :  { %v1457_v42 = vmul.f32 %v3309_v48, %v3895_v6  ;;  %3320 = vrcp.f32 %v1295_v25  ;;  %v4150_v6 = vld [vmem:[#allocation14_spill] sm:$0xff]  ;;  %v4161_v48 = vld [vmem:[#allocation25_spill] sm:$0xff] }
 0x2dc   :  { %v3311_v33 = vpop.eup %3310  ;;  %2760 = vmatprep.mubr.f32.mxu0 %v1440_v21  ;;  %v4162_v21 = vld [vmem:[#allocation28_spill] sm:$0xff] }
 0x2dd   :  { %v1327_v59 = vpop.xlane.xlu1 %1326  ;;  %v1456_v13 = vmul.f32 %v3311_v33, %v3903_v34  ;;  %2761 = vmatmul.mubr.f32.gmra.mrb[52].mxu0 %v1441_v58  ;;  %v3313_v60 = vpop.eup %3312  ;;  %v4163_v58 = vld [vmem:[#allocation24_spill] sm:$0xff] }
 0x2de   :  { %v1293_v10 = vpop.xlane.xlu0 %1292  ;;  %v1443_v34 = vmul.f32 %v3313_v60, %v4149_v30 }
 0x2df   :  { %2816 = vmatprep.mubr.f32.mxu1 %v1456_v13  ;;  %3322 = vrcp.f32 %v1293_v10  ;;  %v4164_v10 = vld [vmem:[#allocation29_spill] sm:$0xff] }
 0x2e0   :  { %2817 = vmatmul.mubr.f32.gmra.mrb[52].mxu1 %v1457_v42  ;;  %3324 = vrcp.f32 %v1327_v59 }
 0x2e1   :  { %v1325_v54 = vpop.xlane.xlu1 %1324  ;;  %v3315_v27 = vpop.eup %3314 }
 0x2e2   :  { %3326 = vrcp.f32 %v1325_v54  ;;  %v3317_v23 = vpop.eup %3316  ;;  %v1299_v17 = vpop.xlane.xlu0 %1298  ;;  %v1442_v45 = vmul.f32 %v3315_v27, %v4148_v32  ;;  %v4165_v54 = vld [vmem:[#allocation30_spill] sm:$0xff]  ;;  %v4166_v32 = vld [vmem:[#allocation31_spill] sm:$0xff] }
 0x2e3   :  { %v1459_v41 = vmul.f32 %v3317_v23, %v4151_v49  ;;  %3328 = vrcp.f32 %v1299_v17 }
 0x2e4   :  { %v3319_v53 = vpop.eup %3318  ;;  %2763 = vmatprep.mubr.f32.mxu0 %v1442_v45 }
 0x2e5   :  { %v1331_v8 = vpop.xlane.xlu1 %1330  ;;  %v1458_v19 = vmul.f32 %v3319_v53, %v4150_v6  ;;  %2764 = vmatmul.mubr.f32.gmra.mrb[54].mxu0 %v1443_v34  ;;  %v3321_v62 = vpop.eup %3320  ;;  %v4167_v53 = vld [vmem:[#allocation32_spill] sm:$0xff] }
 0x2e6   :  { %v1297_v28 = vpop.xlane.xlu0 %1296  ;;  %v1445_v24 = vmul.f32 %v3321_v62, %v4153_v38 }
 0x2e7   :  { %2819 = vmatprep.mubr.f32.mxu1 %v1458_v19  ;;  %3330 = vrcp.f32 %v1297_v28 }
 0x2e8   :  { %2820 = vmatmul.mubr.f32.gmra.mrb[54].mxu1 %v1459_v41  ;;  %3332 = vrcp.f32 %v1331_v8 }
 0x2e9   :  { %v1329_v44 = vpop.xlane.xlu1 %1328  ;;  %v3323_v31 = vpop.eup %3322 }
 0x2ea   :  { %3334 = vrcp.f32 %v1329_v44  ;;  %v3325_v29 = vpop.eup %3324  ;;  %v1303_v51 = vpop.xlane.xlu0 %1302  ;;  %v1444_v40 = vmul.f32 %v3323_v31, %v4152_v56 }
 0x2eb   :  { %v1461_v15 = vmul.f32 %v3325_v29, %v4155_v47  ;;  %3336 = vrcp.f32 %v1303_v51 }
 0x2ec   :  { %v3327_v61 = vpop.eup %3326  ;;  %2766 = vmatprep.mubr.f32.mxu0 %v1444_v40 }
 0x2ed   :  { %v1335_v5 = vpop.xlane.xlu1 %1334  ;;  %v1460_v63 = vmul.f32 %v3327_v61, %v4154_v39  ;;  %2767 = vmatmul.mubr.f32.gmra.mrb[56].mxu0 %v1445_v24  ;;  %v3329_v35 = vpop.eup %3328 }
 0x2ee   :  { %v1301_v1 = vpop.xlane.xlu0 %1300  ;;  %v1447_v50 = vmul.f32 %v3329_v35, %v4157_v3 }
 0x2ef   :  { %2822 = vmatprep.mubr.f32.mxu1 %v1460_v63  ;;  %3338 = vrcp.f32 %v1301_v1 }
 0x2f0   :  { %2823 = vmatmul.mubr.f32.gmra.mrb[56].mxu1 %v1461_v15  ;;  %3340 = vrcp.f32 %v1335_v5 }
 0x2f1   :  { %v1333_v37 = vpop.xlane.xlu1 %1332  ;;  %v3331_v11 = vpop.eup %3330 }
 0x2f2   :  { %3342 = vrcp.f32 %v1333_v37  ;;  %v3333_v46 = vpop.eup %3332  ;;  %v1446_v55 = vmul.f32 %v3331_v11, %v4156_v12 }
 0x2f3   :  { %v1463_v20 = vmul.f32 %v3333_v46, %v4159_v4 }
 0x2f4   :  { %v3335_v16 = vpop.eup %3334  ;;  %2769 = vmatprep.mubr.f32.mxu0 %v1446_v55 }
 0x2f5   :  { %v1462_v9 = vmul.f32 %v3335_v16, %v4158_v43  ;;  %2770 = vmatmul.mubr.f32.gmra.mrb[58].mxu0 %v1447_v50  ;;  %v3337_v57 = vpop.eup %3336 }
 0x2f6   :  { %v1337_v22 = vpop.xlane.xlu1 %1336  ;;  %v1449_v25 = vmul.f32 %v3337_v57, %v4161_v48 }
 0x2f7   :  { %3344 = vrcp.f32 %v1337_v22  ;;  %v1305_v52 = vpop.xlane.xlu0 %1304  ;;  %2825 = vmatprep.mubr.f32.mxu1 %v1462_v9 }
 0x2f8   :  { %3346 = vrcp.f32 %v1305_v52  ;;  %2826 = vmatmul.mubr.f32.gmra.mrb[58].mxu1 %v1463_v20 }
 0x2f9   :  { %v3339_v18 = vpop.eup %3338 }
 0x2fa   :  { %v1339_v2 = vpop.xlane.xlu1 %1338  ;;  %v3341_v7 = vpop.eup %3340  ;;  %v1448_v0 = vmul.f32 %v3339_v18, %v4160_v26 }
 0x2fb   :  { %3348 = vrcp.f32 %v1339_v2  ;;  %v1307_v14 = vpop.xlane.xlu0 %1306  ;;  %v1465_v59 = vmul.f32 %v3341_v7, %v4163_v58 }
 0x2fc   :  { %v3343_v36 = vpop.eup %3342  ;;  %3350 = vrcp.f32 %v1307_v14  ;;  %2772 = vmatprep.mubr.f32.mxu0 %v1448_v0 }
 0x2fd   :  { %v1464_v33 = vmul.f32 %v3343_v36, %v4162_v21  ;;  %2773 = vmatmul.mubr.f32.gmra.mrb[60].mxu0 %v1449_v25 }
 0x2ff   :  { %2828 = vmatprep.mubr.f32.mxu1 %v1464_v33 }
 0x300   :  { %2829 = vmatmul.mubr.f32.gmra.mrb[60].mxu1 %v1465_v59 }
 0x301   :  { %v3345_v13 = vpop.eup %3344 }
 0x302   :  { %v3347_v42 = vpop.eup %3346  ;;  %v1466_v60 = vmul.f32 %v3345_v13, %v4164_v10 }
 0x303   :  { %v1450_v27 = vmul.f32 %v3347_v42, %v4165_v54 }
 0x304   :  { %2831 = vmatprep.mubr.f32.mxu1 %v1466_v60 }
 0x305   :  { %v3349_v23 = vpop.eup %3348  ;;  %2775 = vmatprep.mubr.f32.mxu0 %v1450_v27 }
 0x306   :  { %v3351_v17 = vpop.eup %3350  ;;  %v1467_v45 = vmul.f32 %v3349_v23, %v4166_v32 }
 0x307   :  { %v1451_v30 = vmul.f32 %v3351_v17, %v4167_v53 }
 0x308   :  { %2832 = vmatmul.mubr.f32.gmra.mrb[62].mxu1 %v1467_v45 }
 0x309   :  { %2776 = vmatmul.mubr.f32.gmra.mrb[62].mxu0 %v1451_v30 }
 0x35f   :  { %v2644_v34 = vpop.f32.mrb[32].mxu0 }
 0x360   :  { %2049 = vst [vmem:[#allocation8 + $0x8] sm:$0xff] %v2644_v34  ;;  %v1534_v8 = vpop.f32.mrb[33].mxu0 }
 0x361   :  { %2048 = vst [vmem:[#allocation8] sm:$0xff] %v1534_v8 }
 0x363   :  { %v2700_v6 = vpop.f32.mrb[32].mxu1 }
 0x364   :  { %2065 = vst [vmem:[#allocation8 + $0x88] sm:$0xff] %v2700_v6  ;;  %v1679_v19 = vpop.f32.mrb[33].mxu1 }
 0x365   :  { %2064 = vst [vmem:[#allocation8 + $0x80] sm:$0xff] %v1679_v19 }
 0x368   :  { %v2647_v49 = vpop.f32.mrb[34].mxu0 }
 0x369   :  { %2051 = vst [vmem:[#allocation8 + $0x18] sm:$0xff] %v2647_v49  ;;  %v1544_v41 = vpop.f32.mrb[35].mxu0 }
 0x36a   :  { %2050 = vst [vmem:[#allocation8 + $0x10] sm:$0xff] %v1544_v41 }
 0x36b   :  { %v2703_v28 = vpop.f32.mrb[34].mxu1 }
 0x36c   :  { %2067 = vst [vmem:[#allocation8 + $0x98] sm:$0xff] %v2703_v28  ;;  %v1689_v62 = vpop.f32.mrb[35].mxu1 }
 0x36d   :  { %2066 = vst [vmem:[#allocation8 + $0x90] sm:$0xff] %v1689_v62 }
 0x370   :  { %v2650_v44 = vpop.f32.mrb[36].mxu0 }
 0x371   :  { %2053 = vst [vmem:[#allocation8 + $0x28] sm:$0xff] %v2650_v44  ;;  %v1554_v31 = vpop.f32.mrb[37].mxu0 }
 0x372   :  { %2052 = vst [vmem:[#allocation8 + $0x20] sm:$0xff] %v1554_v31 }
 0x373   :  { %v2706_v29 = vpop.f32.mrb[36].mxu1 }
 0x374   :  { %2069 = vst [vmem:[#allocation8 + $0xa8] sm:$0xff] %v2706_v29  ;;  %v1699_v51 = vpop.f32.mrb[37].mxu1 }
 0x375   :  { %2068 = vst [vmem:[#allocation8 + $0xa0] sm:$0xff] %v1699_v51 }
 0x378   :  { %v2653_v56 = vpop.f32.mrb[38].mxu0 }
 0x379   :  { %2055 = vst [vmem:[#allocation8 + $0x38] sm:$0xff] %v2653_v56  ;;  %v1564_v40 = vpop.f32.mrb[39].mxu0 }
 0x37a   :  { %2054 = vst [vmem:[#allocation8 + $0x30] sm:$0xff] %v1564_v40 }
 0x37b   :  { %v2709_v61 = vpop.f32.mrb[38].mxu1 }
 0x37c   :  { %2071 = vst [vmem:[#allocation8 + $0xb8] sm:$0xff] %v2709_v61  ;;  %v1709_v38 = vpop.f32.mrb[39].mxu1 }
 0x37d   :  { %2070 = vst [vmem:[#allocation8 + $0xb0] sm:$0xff] %v1709_v38 }
 0x380   :  { %v2656_v24 = vpop.f32.mrb[40].mxu0 }
 0x381   :  { %2057 = vst [vmem:[#allocation8 + $0x48] sm:$0xff] %v2656_v24  ;;  %v1574_v5 = vpop.f32.mrb[41].mxu0 }
 0x382   :  { %2056 = vst [vmem:[#allocation8 + $0x40] sm:$0xff] %v1574_v5 }
 0x383   :  { %v2712_v39 = vpop.f32.mrb[40].mxu1 }
 0x384   :  { %2073 = vst [vmem:[#allocation8 + $0xc8] sm:$0xff] %v2712_v39  ;;  %v1719_v63 = vpop.f32.mrb[41].mxu1 }
 0x385   :  { %2072 = vst [vmem:[#allocation8 + $0xc0] sm:$0xff] %v1719_v63 }
 0x388   :  { %v2659_v47 = vpop.f32.mrb[42].mxu0 }
 0x389   :  { %2059 = vst [vmem:[#allocation8 + $0x58] sm:$0xff] %v2659_v47  ;;  %v1584_v15 = vpop.f32.mrb[43].mxu0 }
 0x38a   :  { %2058 = vst [vmem:[#allocation8 + $0x50] sm:$0xff] %v1584_v15 }
 0x38b   :  { %v2715_v1 = vpop.f32.mrb[42].mxu1 }
 0x38c   :  { %2075 = vst [vmem:[#allocation8 + $0xd8] sm:$0xff] %v2715_v1  ;;  %v1729_v35 = vpop.f32.mrb[43].mxu1 }
 0x38d   :  { %2074 = vst [vmem:[#allocation8 + $0xd0] sm:$0xff] %v1729_v35 }
 0x390   :  { %v2662_v37 = vpop.f32.mrb[44].mxu0 }
 0x391   :  { %2061 = vst [vmem:[#allocation8 + $0x68] sm:$0xff] %v2662_v37  ;;  %v1594_v11 = vpop.f32.mrb[45].mxu0 }
 0x392   :  { %2060 = vst [vmem:[#allocation8 + $0x60] sm:$0xff] %v1594_v11 }
 0x393   :  { %v2718_v46 = vpop.f32.mrb[44].mxu1 }
 0x394   :  { %2077 = vst [vmem:[#allocation8 + $0xe8] sm:$0xff] %v2718_v46  ;;  %v1739_v12 = vpop.f32.mrb[45].mxu1 }
 0x395   :  { %2076 = vst [vmem:[#allocation8 + $0xe0] sm:$0xff] %v1739_v12 }
 0x398   :  { %v2665_v55 = vpop.f32.mrb[46].mxu0 }
 0x399   :  { %2063 = vst [vmem:[#allocation8 + $0x78] sm:$0xff] %v2665_v55  ;;  %v1604_v16 = vpop.f32.mrb[47].mxu0 }
 0x39a   :  { %2062 = vst [vmem:[#allocation8 + $0x70] sm:$0xff] %v1604_v16 }
 0x39b   :  { %v2721_v3 = vpop.f32.mrb[46].mxu1 }
 0x39c   :  { %2079 = vst [vmem:[#allocation8 + $0xf8] sm:$0xff] %v2721_v3  ;;  %v1749_v50 = vpop.f32.mrb[47].mxu1 }
 0x39d   :  { %2078 = vst [vmem:[#allocation8 + $0xf0] sm:$0xff] %v1749_v50 }
 0x3a0   :  { %v2756_v43 = vpop.f32.mrb[48].mxu0 }
 0x3a1   :  { %2081 = vst [vmem:[#allocation8 + $0x108] sm:$0xff] %v2756_v43  ;;  %v1824_v9 = vpop.f32.mrb[49].mxu0 }
 0x3a2   :  { %2080 = vst [vmem:[#allocation8 + $0x100] sm:$0xff] %v1824_v9 }
 0x3a3   :  { %v2812_v22 = vpop.f32.mrb[48].mxu1 }
 0x3a4   :  { %2097 = vst [vmem:[#allocation8 + $0x188] sm:$0xff] %v2812_v22  ;;  %v1969_v4 = vpop.f32.mrb[49].mxu1 }
 0x3a5   :  { %2096 = vst [vmem:[#allocation8 + $0x180] sm:$0xff] %v1969_v4 }
 0x3a8   :  { %v2759_v20 = vpop.f32.mrb[50].mxu0 }
 0x3a9   :  { %2083 = vst [vmem:[#allocation8 + $0x118] sm:$0xff] %v2759_v20  ;;  %v1834_v52 = vpop.f32.mrb[51].mxu0 }
 0x3aa   :  { %2082 = vst [vmem:[#allocation8 + $0x110] sm:$0xff] %v1834_v52 }
 0x3ab   :  { %v2815_v57 = vpop.f32.mrb[50].mxu1 }
 0x3ac   :  { %2099 = vst [vmem:[#allocation8 + $0x198] sm:$0xff] %v2815_v57  ;;  %v1979_v18 = vpop.f32.mrb[51].mxu1 }
 0x3ad   :  { %2098 = vst [vmem:[#allocation8 + $0x190] sm:$0xff] %v1979_v18 }
 0x3b0   :  { %v2762_v2 = vpop.f32.mrb[52].mxu0 }
 0x3b1   :  { %2085 = vst [vmem:[#allocation8 + $0x128] sm:$0xff] %v2762_v2  ;;  %v1844_v7 = vpop.f32.mrb[53].mxu0 }
 0x3b2   :  { %2084 = vst [vmem:[#allocation8 + $0x120] sm:$0xff] %v1844_v7 }
 0x3b3   :  { %v2818_v14 = vpop.f32.mrb[52].mxu1 }
 0x3b4   :  { %2101 = vst [vmem:[#allocation8 + $0x1a8] sm:$0xff] %v2818_v14  ;;  %v1989_v26 = vpop.f32.mrb[53].mxu1 }
 0x3b5   :  { %2100 = vst [vmem:[#allocation8 + $0x1a0] sm:$0xff] %v1989_v26 }
 0x3b8   :  { %v2765_v0 = vpop.f32.mrb[54].mxu0 }
 0x3b9   :  { %2087 = vst [vmem:[#allocation8 + $0x138] sm:$0xff] %v2765_v0  ;;  %v1854_v36 = vpop.f32.mrb[55].mxu0 }
 0x3ba   :  { %2086 = vst [vmem:[#allocation8 + $0x130] sm:$0xff] %v1854_v36 }
 0x3bb   :  { %v2821_v48 = vpop.f32.mrb[54].mxu1 }
 0x3bc   :  { %2103 = vst [vmem:[#allocation8 + $0x1b8] sm:$0xff] %v2821_v48  ;;  %v1999_v25 = vpop.f32.mrb[55].mxu1 }
 0x3bd   :  { %2102 = vst [vmem:[#allocation8 + $0x1b0] sm:$0xff] %v1999_v25 }
 0x3c0   :  { %v2768_v21 = vpop.f32.mrb[56].mxu0 }
 0x3c1   :  { %2089 = vst [vmem:[#allocation8 + $0x148] sm:$0xff] %v2768_v21  ;;  %v1864_v33 = vpop.f32.mrb[57].mxu0 }
 0x3c2   :  { %2088 = vst [vmem:[#allocation8 + $0x140] sm:$0xff] %v1864_v33 }
 0x3c3   :  { %v2824_v58 = vpop.f32.mrb[56].mxu1 }
 0x3c4   :  { %2105 = vst [vmem:[#allocation8 + $0x1c8] sm:$0xff] %v2824_v58  ;;  %v2009_v59 = vpop.f32.mrb[57].mxu1 }
 0x3c5   :  { %2104 = vst [vmem:[#allocation8 + $0x1c0] sm:$0xff] %v2009_v59 }
 0x3c8   :  { %v2771_v13 = vpop.f32.mrb[58].mxu0 }
 0x3c9   :  { %2091 = vst [vmem:[#allocation8 + $0x158] sm:$0xff] %v2771_v13  ;;  %v1874_v42 = vpop.f32.mrb[59].mxu0 }
 0x3ca   :  { %2090 = vst [vmem:[#allocation8 + $0x150] sm:$0xff] %v1874_v42 }
 0x3cb   :  { %v2827_v10 = vpop.f32.mrb[58].mxu1 }
 0x3cc   :  { %2107 = vst [vmem:[#allocation8 + $0x1d8] sm:$0xff] %v2827_v10  ;;  %v2019_v60 = vpop.f32.mrb[59].mxu1 }
 0x3cd   :  { %2106 = vst [vmem:[#allocation8 + $0x1d0] sm:$0xff] %v2019_v60 }
 0x3d0   :  { %v2774_v54 = vpop.f32.mrb[60].mxu0 }
 0x3d1   :  { %2093 = vst [vmem:[#allocation8 + $0x168] sm:$0xff] %v2774_v54  ;;  %v1884_v27 = vpop.f32.mrb[61].mxu0 }
 0x3d2   :  { %2092 = vst [vmem:[#allocation8 + $0x160] sm:$0xff] %v1884_v27 }
 0x3d3   :  { %v2830_v23 = vpop.f32.mrb[60].mxu1 }
 0x3d4   :  { %2109 = vst [vmem:[#allocation8 + $0x1e8] sm:$0xff] %v2830_v23  ;;  %v2029_v17 = vpop.f32.mrb[61].mxu1 }
 0x3d5   :  { %2108 = vst [vmem:[#allocation8 + $0x1e0] sm:$0xff] %v2029_v17 }
 0x3db   :  { %v2833_v32 = vpop.f32.mrb[62].mxu1 }
 0x3dc   :  { %2111 = vst [vmem:[#allocation8 + $0x1f8] sm:$0xff] %v2833_v32  ;;  %v2777_v45 = vpop.f32.mrb[62].mxu0  ;;  %v2039_v53 = vpop.f32.mrb[63].mxu1 }
 0x3dd   :  { %2095 = vst [vmem:[#allocation8 + $0x178] sm:$0xff] %v2777_v45  ;;  %2110 = vst [vmem:[#allocation8 + $0x1f0] sm:$0xff] %v2039_v53  ;;  %v1894_v30 = vpop.f32.mrb[63].mxu0 }
 0x3de   :  { %2094 = vst [vmem:[#allocation8 + $0x170] sm:$0xff] %v1894_v30 }
 0x3df   :  { %3429 = shalt.err (!%p3426_p0)
}
 0x3e0   :  { %s3430_s27 = scalar_lea.hbm %s4062_s3, 8192 }
 0x3e1   :  { %p3431_p1 = scmp.ne.s32.totalorder %s4062_s3, %s3430_s27  ;;  %p3434_p2 = scmp.lt.u32.totalorder %s3430_s27, %s4062_s3 }
 0x3e3   :  { %p3436_p3 = pnand %p3434_p2, %p3431_p1 }
 0x3e5   :  { %3439 = shalt.err (!%p3436_p3)
}
 0x3e6   :  { %2123 = dma.vmem_to_hbm [thread:$0]  %s2118_s21, 8192, %s4062_s3, [#allocation4], %s3448_s24, %s3448_s24, %s3449_s25  }
 0x3e7   :  { %3444 = dma.done.wait [#allocation4], 8192  }
 0x3e8   :  { %3445 = vsyncadd [#allocation4], 4294959104 }
 0x3e9   :  { %2127 = vsyncpa [#allocation3], 1 }
 0x3ea   :  { %2128 = vsyncpa [#allocation6], 1 }
 0x3eb   :  { %2129 = vsyncpa [#allocation4], 1 }

</bundles_post_ra>
